<compile_context>
chip_gen: v7x
topology: tpu7x:2x2x1
jax: 0.10.0
libtpu: 0.0.40
codegen_flags: <defaults>
</compile_context>

<pallas_src>
import functools

import jax
import jax.numpy as jnp
from jax.experimental import pallas as pl
from jax.experimental.pallas import tpu as pltpu


# ----------------------------------------------------------------------------
# Kernel 1: fused kp-extractor preprocessing for (src_image, img_gen)
#   out = clamp((nearest_resize_256(x) + 1) / 2, 0, 1)
# expressed as  (0.5*G_r) @ X_plane @ G_c  + 0.5,  clamp.
# ----------------------------------------------------------------------------
def _kp_pre_kernel(x_ref, gr_ref, gc_ref, o_ref, *, planes, in_h):
    gc = gc_ref[...]                                            # (W, S) bf16 one-hot
    gr = gr_ref[...]                                            # (S, H) bf16 0.5*one-hot
    x = x_ref[...]                                              # (planes*H, W) bf16
    # Column gather for ALL planes at once: one MXU matmul with M = planes*H.
    y = jnp.dot(x, gc, preferred_element_type=jnp.float32)      # (planes*H, S)
    y = y.astype(jnp.bfloat16)                                  # exact: gathered bf16 samples
    for p in range(planes):                                     # static unroll
        yp = y[p * in_h:(p + 1) * in_h, :]                      # (H, S)
        z = jnp.dot(gr, yp, preferred_element_type=jnp.float32)  # (S, S) = 0.5*resize
        o_ref[p] = jnp.clip(z + 0.5, 0.0, 1.0)                  # ((resize)+1)/2, clamped


def _choose_planes_per_block(total_planes, max_planes):
    ppb = 1
    for cand in range(1, min(total_planes, max_planes) + 1):
        if total_planes % cand == 0:
            ppb = cand
    # Prefer an even-length grid so v7x's two TensorCores split evenly; on
    # v5e/v6e (single TC) the extra grid step costs ~0.35 us, i.e. noise.
    if (total_planes // ppb) % 2 == 1 and ppb % 2 == 0:
        ppb //= 2
    return ppb


def kp_preprocess_pair(src, gen, out_size=256):
    """src, gen: (N, C, H, W) float in [-1, 1] -> two (N, C, 256, 256) in [0, 1]."""
    N, C, H, W = src.shape
    T = 2 * N * C                                              # total planes (even)
    planes = jnp.concatenate(
        [src.reshape(N * C, H, W), gen.reshape(N * C, H, W)], axis=0)
    planes2d = planes.reshape(T * H, W).astype(jnp.bfloat16)   # deliberate tiny
                                                               # precision tradeoff
    # F.interpolate(mode='nearest'): in_idx = floor(out_idx * in / out)
    row_idx = (jnp.arange(out_size) * H) // out_size
    col_idx = (jnp.arange(out_size) * W) // out_size
    # one-hot 0/1 and the folded 0.5 scale are exact in bf16
    g_r = (jax.nn.one_hot(row_idx, H, dtype=jnp.float32) * 0.5).astype(jnp.bfloat16)
    g_c = jax.nn.one_hot(col_idx, W, dtype=jnp.float32).T.astype(jnp.bfloat16)

    # VMEM budget for the double-buffered f32 output blocks (~8 MiB) keeps the
    # tile size safe even on v7x (64 MiB physical / 32 MiB default scoped VMEM).
    max_ppb = max(1, (8 * 1024 * 1024) // (2 * out_size * out_size * 4))
    ppb = _choose_planes_per_block(T, max_ppb)
    grid = (T // ppb,)

    out = pl.pallas_call(
        functools.partial(_kp_pre_kernel, planes=ppb, in_h=H),
        out_shape=jax.ShapeDtypeStruct((T, out_size, out_size), jnp.float32),
        grid=grid,
        in_specs=[
            pl.BlockSpec((ppb * H, W), lambda i: (i, 0)),
            pl.BlockSpec((out_size, H), lambda i: (0, 0)),
            pl.BlockSpec((W, out_size), lambda i: (0, 0)),
        ],
        out_specs=pl.BlockSpec((ppb, out_size, out_size), lambda i: (i, 0, 0)),
        compiler_params=pltpu.CompilerParams(
            dimension_semantics=("parallel",)),
    )(planes2d, g_r, g_c)

    src_pre = out[: N * C].reshape(N, C, out_size, out_size)
    gen_pre = out[N * C:].reshape(N, C, out_size, out_size)
    return src_pre, gen_pre


# ----------------------------------------------------------------------------
# Kernel 2: fused scalar losses (pixel-tiled accumulation over the grid)
#   kp_loss   = MSE(src[:,0:17], gen[:,0:17]) + MSE(src[:,27:36], gen[:,27:36])
#   hair_loss = CrossEntropyLoss(weight=w)(logits, targets)
#             = sum_i w[y_i] * nll_i / sum_i w[y_i]   (guarded against den==0)
# logits are fed as (C, P) so the P = N*H*W pixel axis is lane-dense and the
# log-softmax reduction is over the class (sublane) axis.
# ----------------------------------------------------------------------------
def _loss_kernel(sa_ref, ga_ref, sb_ref, gb_ref, logits_ref, tgt_ref, o_ref,
                 num_ref, den_ref, *, inv_na, inv_nb, weighted_classes):
    i = pl.program_id(0)

    @pl.when(i == 0)
    def _():
        num_ref[...] = jnp.zeros_like(num_ref)
        den_ref[...] = jnp.zeros_like(den_ref)

    # weighted cross-entropy partial sums for this pixel tile
    x = logits_ref[...].astype(jnp.float32)                     # (C, TP)
    tgt = tgt_ref[...]                                          # (1, TP) int32, pad = -1
    m = jnp.max(x, axis=0, keepdims=True)                       # (1, TP)
    lse = jnp.log(jnp.sum(jnp.exp(x - m), axis=0, keepdims=True)) + m
    cls = jax.lax.broadcasted_iota(jnp.int32, x.shape, 0)
    onehot = (cls == tgt).astype(jnp.float32)                   # (C, TP)
    logp_t = jnp.sum(x * onehot, axis=0, keepdims=True) - lse   # (1, TP)
    # class weights {0,1,6,10} -> 1 baked in as constants (no weight DMA);
    # padded pixels (tgt == -1) get weight 0 and contribute nothing.
    w_t = jnp.zeros_like(logp_t)
    for c in weighted_classes:
        w_t = w_t + (tgt == c).astype(jnp.float32)
    num_ref[...] += jnp.sum(-logp_t * w_t, axis=1, keepdims=True)
    den_ref[...] += jnp.sum(w_t, axis=1, keepdims=True)

    # finalize: landmark MSE (resident tiny blocks) + normalized CE, one store
    @pl.when(i == pl.num_programs(0) - 1)
    def _():
        da = sa_ref[...] - ga_ref[...]
        db = sb_ref[...] - gb_ref[...]
        kp = (jnp.sum(da * da, axis=1, keepdims=True) * inv_na
              + jnp.sum(db * db, axis=1, keepdims=True) * inv_nb)   # (1, 1)
        den = den_ref[...]
        # den is an integer-valued count, so max(den,1) is exact whenever den>0.
        hair = jnp.where(den > 0.0, num_ref[...] / jnp.maximum(den, 1.0),
                         jnp.zeros_like(den))
        o_ref[...] = jnp.concatenate([kp, hair], axis=-1)


def fused_losses(src_kp, gen_kp, down_seg, painted_mask, *, pixel_tile=16384):
    """src_kp/gen_kp: (N, 68, 3); down_seg: (N, C, H, W); painted_mask: (N, H, W)."""
    n, c, h, w = down_seg.shape
    P = n * h * w

    sa = src_kp[:, 0:17].reshape(1, -1).astype(jnp.float32)
    ga = gen_kp[:, 0:17].reshape(1, -1).astype(jnp.float32)
    sb = src_kp[:, 27:36].reshape(1, -1).astype(jnp.float32)
    gb = gen_kp[:, 27:36].reshape(1, -1).astype(jnp.float32)
    inv_na = 1.0 / float(sa.shape[1])
    inv_nb = 1.0 / float(sb.shape[1])

    def lane_pad(v):  # zero-pad to 128 lanes; zeros are exact no-ops for the MSE sums
        pad = (-v.shape[1]) % 128
        return jnp.pad(v, ((0, 0), (0, pad))) if pad else v
    sa, ga, sb, gb = lane_pad(sa), lane_pad(ga), lane_pad(sb), lane_pad(gb)

    logits = jnp.moveaxis(down_seg, 1, 0).reshape(c, P).astype(jnp.float32)  # (C, P)
    tgt = painted_mask.reshape(1, P).astype(jnp.int32)

    # pixel tile: multiple of 128 lanes; pad tail pixels with tgt = -1 (weight 0).
    tp = min(pixel_tile, ((P + 127) // 128) * 128)
    p_pad = pl.cdiv(P, tp) * tp
    if p_pad != P:
        logits = jnp.pad(logits, ((0, 0), (0, p_pad - P)))
        tgt = jnp.pad(tgt, ((0, 0), (0, p_pad - P)), constant_values=-1)
    grid = (p_pad // tp,)

    kernel = functools.partial(
        _loss_kernel, inv_na=inv_na, inv_nb=inv_nb,
        weighted_classes=(0, 1, 6, 10))
    out = pl.pallas_call(
        kernel,
        out_shape=jax.ShapeDtypeStruct((1, 2), jnp.float32),
        grid=grid,
        in_specs=[
            pl.BlockSpec(sa.shape, lambda i: (0, 0)),
            pl.BlockSpec(ga.shape, lambda i: (0, 0)),
            pl.BlockSpec(sb.shape, lambda i: (0, 0)),
            pl.BlockSpec(gb.shape, lambda i: (0, 0)),
            pl.BlockSpec((c, tp), lambda i: (0, i)),
            pl.BlockSpec((1, tp), lambda i: (0, i)),
        ],
        out_specs=pl.BlockSpec((1, 2), lambda i: (0, 0)),
        scratch_shapes=[pltpu.VMEM((1, 1), jnp.float32),
                        pltpu.VMEM((1, 1), jnp.float32)],
        compiler_params=pltpu.CompilerParams(
            dimension_semantics=("arbitrary",)),
    )(sa, ga, sb, gb, logits, tgt)
    return out[0, 0], out[0, 1]


# ----------------------------------------------------------------------------
# TextProxy forward (one inner-loop step's loss computation)
# ----------------------------------------------------------------------------
@functools.partial(jax.jit, static_argnames=("clip_lambda", "landmark_lambda",
                                             "hair_mask_lambda"))
def text_proxy_step(src_image, img_gen, src_kp, gen_kp, down_seg, painted_mask,
                    c_loss, *, clip_lambda, landmark_lambda, hair_mask_lambda):
    # inference_on_kp_extractor(): resize/normalize/clamp preprocessing is the
    # Pallas kernel (src and gen fused into one call).
    src_pre, gen_pre = kp_preprocess_pair(src_image, img_gen)
    # TODO(synk): face_alignment.face_alignment_net (pretrained FAN) has no
    # Pallas equivalent; its outputs (src_kp / gen_kp) are supplied.
    # TODO(synk): CLIPLoss / AugCLIPLoss (pretrained CLIP) not translatable;
    # c_loss is taken as an input scalar.
    # TODO(synk): generator.decoder.synthesis (StyleGAN), the seg net, and the
    # Adam loop over latents are external / training-side; img_gen and
    # down_seg (seg-net logits) are supplied.

    kp_loss, hair_mask_loss = fused_losses(src_kp, gen_kp, down_seg, painted_mask)

    loss = (clip_lambda * c_loss
            + landmark_lambda * kp_loss
            + hair_mask_lambda * hair_mask_loss)
    return loss, kp_loss, hair_mask_loss, src_pre, gen_pre


if __name__ == "__main__":
    key = jax.random.PRNGKey(0)
    k1, k2, k3, k4, k5, k6 = jax.random.split(key, 6)

    N, C, H, W = 1, 3, 32, 32            # images (NCHW), values in [-1, 1]
    src_image = jax.random.uniform(k1, (N, C, H, W), jnp.float32, -1.0, 1.0)
    img_gen = jax.random.uniform(k2, (N, C, H, W), jnp.float32, -1.0, 1.0)

    src_kp = jax.random.normal(k3, (N, 68, 3), jnp.float32)   # 3D landmarks
    gen_kp = jax.random.normal(k4, (N, 68, 3), jnp.float32)

    SH = SW = 16                          # seg-net output resolution (small)
    down_seg = jax.random.normal(k5, (N, 16, SH, SW), jnp.float32)
    painted_mask = jax.random.randint(k6, (N, SH, SW), 0, 16, jnp.int32)

    c_loss = jnp.float32(0.7)             # stand-in CLIP loss scalar

    loss, kp_loss, hair_loss, src_pre, gen_pre = text_proxy_step(
        src_image, img_gen, src_kp, gen_kp, down_seg, painted_mask, c_loss,
        clip_lambda=2.0, landmark_lambda=0.05, hair_mask_lambda=1.0)
    jax.block_until_ready((loss, kp_loss, hair_loss, src_pre, gen_pre))

    assert src_pre.shape == (N, C, 256, 256)
    assert gen_pre.shape == (N, C, 256, 256)
    assert bool(jnp.isfinite(loss))

    # pure-JAX reference checks (nearest resize + norm/clamp; MSE; weighted CE)
    ri = (jnp.arange(256) * H) // 256
    ci = (jnp.arange(256) * W) // 256
    ref_src = jnp.clip((src_image[:, :, ri, :][:, :, :, ci] + 1.0) * 0.5, 0.0, 1.0)
    ref_gen = jnp.clip((img_gen[:, :, ri, :][:, :, :, ci] + 1.0) * 0.5, 0.0, 1.0)
    assert float(jnp.max(jnp.abs(src_pre - ref_src))) < 1e-2   # bf16 image rounding
    assert float(jnp.max(jnp.abs(gen_pre - ref_gen))) < 1e-2

    kp_ref = (jnp.mean((src_kp[:, 0:17] - gen_kp[:, 0:17]) ** 2)
              + jnp.mean((src_kp[:, 27:36] - gen_kp[:, 27:36]) ** 2))
    logp = jax.nn.log_softmax(down_seg, axis=1)
    nll = -jnp.take_along_axis(logp, painted_mask[:, None], axis=1)[:, 0]
    wmap = sum((painted_mask == c).astype(jnp.float32) for c in (0, 1, 6, 10))
    hair_ref = jnp.sum(nll * wmap) / jnp.sum(wmap)
    assert abs(float(kp_loss - kp_ref)) < 1e-4
    assert abs(float(hair_loss - hair_ref)) < 1e-4

    print("KERNEL_OK")
</pallas_src>

<mosaic_0001>
module attributes {stable_mosaic.version = 11 : i64} {
  func.func @_kp_pre_kernel(%arg0: i32, %arg1: memref<96x32xbf16, #tpu.memory_space<vmem>>, %arg2: memref<256x32xbf16, #tpu.memory_space<vmem>>, %arg3: memref<32x256xbf16, #tpu.memory_space<vmem>>, %arg4: memref<3x256x256xf32, #tpu.memory_space<vmem>>) attributes {dimension_semantics = [#tpu.dimension_semantics<parallel>], iteration_bounds = array<i64: 2>, scalar_prefetch = 0 : i64, scratch_operands = 0 : i64, tpu.core_type = #tpu.core_type<tc>, window_params = [{transform_indices = @transform_0, window_bounds = array<i64: 96, 32>}, {pipeline_mode = #tpu.pipeline_mode<synchronous>, transform_indices = @transform_1, window_bounds = array<i64: 256, 32>}, {pipeline_mode = #tpu.pipeline_mode<synchronous>, transform_indices = @transform_2, window_bounds = array<i64: 32, 256>}, {transform_indices = @transform_3, window_bounds = array<i64: 3, 256, 256>}]} {
    %c0 = arith.constant 0 : index
    %c0_0 = arith.constant 0 : index
    %0 = vector.load %arg3[%c0, %c0_0] : memref<32x256xbf16, #tpu.memory_space<vmem>>, vector<32x256xbf16>
    %c0_1 = arith.constant 0 : index
    %c0_2 = arith.constant 0 : index
    %1 = vector.load %arg2[%c0_1, %c0_2] : memref<256x32xbf16, #tpu.memory_space<vmem>>, vector<256x32xbf16>
    %c0_3 = arith.constant 0 : index
    %c0_4 = arith.constant 0 : index
    %2 = vector.load %arg1[%c0_3, %c0_4] : memref<96x32xbf16, #tpu.memory_space<vmem>>, vector<96x32xbf16>
    %cst = arith.constant dense<0.000000e+00> : vector<96x256xf32>
    %3 = tpu.matmul %2, %0, %cst {dimension_numbers = #tpu.dot_dimension_numbers<[1], [0], [0], [1], [0, 0, 1, 1], [], []>} : vector<96x32xbf16>, vector<32x256xbf16>, vector<96x256xf32> -> vector<96x256xf32>
    %4 = arith.truncf %3 : vector<96x256xf32> to vector<96x256xbf16>
    %5 = vector.extract_strided_slice %4 {offsets = [0, 0], sizes = [32, 256], strides = [1, 1]} : vector<96x256xbf16> to vector<32x256xbf16>
    %cst_5 = arith.constant dense<0.000000e+00> : vector<256x256xf32>
    %6 = tpu.matmul %1, %5, %cst_5 {dimension_numbers = #tpu.dot_dimension_numbers<[1], [0], [0], [1], [0, 0, 1, 1], [], []>} : vector<256x32xbf16>, vector<32x256xbf16>, vector<256x256xf32> -> vector<256x256xf32>
    %cst_6 = arith.constant 5.000000e-01 : f32
    %7 = vector.broadcast %cst_6 : f32 to vector<256x256xf32>
    %8 = arith.addf %6, %7 : vector<256x256xf32>
    %cst_7 = arith.constant 0.000000e+00 : f32
    %cst_8 = arith.constant 1.000000e+00 : f32
    %9 = vector.broadcast %cst_7 : f32 to vector<256x256xf32>
    %10 = arith.maximumf %9, %8 : vector<256x256xf32>
    %11 = vector.broadcast %cst_8 : f32 to vector<256x256xf32>
    %12 = arith.minimumf %11, %10 : vector<256x256xf32>
    %c0_9 = arith.constant 0 : index
    %c0_10 = arith.constant 0 : index
    %c0_11 = arith.constant 0 : index
    %13 = vector.load %arg4[%c0_9, %c0_10, %c0_11] : memref<3x256x256xf32, #tpu.memory_space<vmem>>, vector<1x256x256xf32>
    %14 = vector.shape_cast %13 : vector<1x256x256xf32> to vector<256x256xf32>
    %15 = vector.shape_cast %12 : vector<256x256xf32> to vector<1x256x256xf32>
    tpu.vector_store %arg4[%c0_9, %c0_10, %c0_11], %15 {strides = array<i32>} : memref<3x256x256xf32, #tpu.memory_space<vmem>>, vector<1x256x256xf32>,
    %16 = vector.extract_strided_slice %4 {offsets = [32, 0], sizes = [32, 256], strides = [1, 1]} : vector<96x256xbf16> to vector<32x256xbf16>
    %cst_12 = arith.constant dense<0.000000e+00> : vector<256x256xf32>
    %17 = tpu.matmul %1, %16, %cst_12 {dimension_numbers = #tpu.dot_dimension_numbers<[1], [0], [0], [1], [0, 0, 1, 1], [], []>} : vector<256x32xbf16>, vector<32x256xbf16>, vector<256x256xf32> -> vector<256x256xf32>
    %cst_13 = arith.constant 5.000000e-01 : f32
    %18 = vector.broadcast %cst_13 : f32 to vector<256x256xf32>
    %19 = arith.addf %17, %18 : vector<256x256xf32>
    %cst_14 = arith.constant 0.000000e+00 : f32
    %cst_15 = arith.constant 1.000000e+00 : f32
    %20 = vector.broadcast %cst_14 : f32 to vector<256x256xf32>
    %21 = arith.maximumf %20, %19 : vector<256x256xf32>
    %22 = vector.broadcast %cst_15 : f32 to vector<256x256xf32>
    %23 = arith.minimumf %22, %21 : vector<256x256xf32>
    %c1 = arith.constant 1 : index
    %c0_16 = arith.constant 0 : index
    %c0_17 = arith.constant 0 : index
    %24 = vector.load %arg4[%c1, %c0_16, %c0_17] : memref<3x256x256xf32, #tpu.memory_space<vmem>>, vector<1x256x256xf32>
    %25 = vector.shape_cast %24 : vector<1x256x256xf32> to vector<256x256xf32>
    %26 = vector.shape_cast %23 : vector<256x256xf32> to vector<1x256x256xf32>
    tpu.vector_store %arg4[%c1, %c0_16, %c0_17], %26 {strides = array<i32>} : memref<3x256x256xf32, #tpu.memory_space<vmem>>, vector<1x256x256xf32>,
    %27 = vector.extract_strided_slice %4 {offsets = [64, 0], sizes = [32, 256], strides = [1, 1]} : vector<96x256xbf16> to vector<32x256xbf16>
    %cst_18 = arith.constant dense<0.000000e+00> : vector<256x256xf32>
    %28 = tpu.matmul %1, %27, %cst_18 {dimension_numbers = #tpu.dot_dimension_numbers<[1], [0], [0], [1], [0, 0, 1, 1], [], []>} : vector<256x32xbf16>, vector<32x256xbf16>, vector<256x256xf32> -> vector<256x256xf32>
    %cst_19 = arith.constant 5.000000e-01 : f32
    %29 = vector.broadcast %cst_19 : f32 to vector<256x256xf32>
    %30 = arith.addf %28, %29 : vector<256x256xf32>
    %cst_20 = arith.constant 0.000000e+00 : f32
    %cst_21 = arith.constant 1.000000e+00 : f32
    %31 = vector.broadcast %cst_20 : f32 to vector<256x256xf32>
    %32 = arith.maximumf %31, %30 : vector<256x256xf32>
    %33 = vector.broadcast %cst_21 : f32 to vector<256x256xf32>
    %34 = arith.minimumf %33, %32 : vector<256x256xf32>
    %c2 = arith.constant 2 : index
    %c0_22 = arith.constant 0 : index
    %c0_23 = arith.constant 0 : index
    %35 = vector.load %arg4[%c2, %c0_22, %c0_23] : memref<3x256x256xf32, #tpu.memory_space<vmem>>, vector<1x256x256xf32>
    %36 = vector.shape_cast %35 : vector<1x256x256xf32> to vector<256x256xf32>
    %37 = vector.shape_cast %34 : vector<256x256xf32> to vector<1x256x256xf32>
    tpu.vector_store %arg4[%c2, %c0_22, %c0_23], %37 {strides = array<i32>} : memref<3x256x256xf32, #tpu.memory_space<vmem>>, vector<1x256x256xf32>,
    return
  }
  func.func @transform_0(%arg0: i32) -> (i32, i32) {
    %c0_i32 = arith.constant 0 : i32
    %c0_i32_0 = arith.constant 0 : i32
    return %arg0, %c0_i32 : i32, i32
  }
  func.func @transform_1(%arg0: i32) -> (i32, i32) {
    %c0_i32 = arith.constant 0 : i32
    %c0_i32_0 = arith.constant 0 : i32
    %c0_i32_1 = arith.constant 0 : i32
    return %c0_i32, %c0_i32_0 : i32, i32
  }
  func.func @transform_2(%arg0: i32) -> (i32, i32) {
    %c0_i32 = arith.constant 0 : i32
    %c0_i32_0 = arith.constant 0 : i32
    %c0_i32_1 = arith.constant 0 : i32
    return %c0_i32, %c0_i32_0 : i32, i32
  }
  func.func @transform_3(%arg0: i32) -> (i32, i32, i32) {
    %c0_i32 = arith.constant 0 : i32
    %c0_i32_0 = arith.constant 0 : i32
    %c0_i32_1 = arith.constant 0 : i32
    return %arg0, %c0_i32, %c0_i32_0 : i32, i32, i32
  }
}

module attributes {stable_mosaic.version = 11 : i64} {
  func.func @_loss_kernel(%arg0: i32, %arg1: memref<1x128xf32, #tpu.memory_space<vmem>>, %arg2: memref<1x128xf32, #tpu.memory_space<vmem>>, %arg3: memref<1x128xf32, #tpu.memory_space<vmem>>, %arg4: memref<1x128xf32, #tpu.memory_space<vmem>>, %arg5: memref<16x256xf32, #tpu.memory_space<vmem>>, %arg6: memref<1x256xi32, #tpu.memory_space<vmem>>, %arg7: memref<1x2xf32, #tpu.memory_space<vmem>>, %arg8: memref<1x1xf32, #tpu.memory_space<vmem>>, %arg9: memref<1x1xf32, #tpu.memory_space<vmem>>) attributes {dimension_semantics = [#tpu.dimension_semantics<arbitrary>], iteration_bounds = array<i64: 1>, scalar_prefetch = 0 : i64, scratch_operands = 2 : i64, tpu.core_type = #tpu.core_type<tc>, window_params = [{pipeline_mode = #tpu.pipeline_mode<synchronous>, transform_indices = @transform_0, window_bounds = array<i64: 1, 128>}, {pipeline_mode = #tpu.pipeline_mode<synchronous>, transform_indices = @transform_1, window_bounds = array<i64: 1, 128>}, {pipeline_mode = #tpu.pipeline_mode<synchronous>, transform_indices = @transform_2, window_bounds = array<i64: 1, 128>}, {pipeline_mode = #tpu.pipeline_mode<synchronous>, transform_indices = @transform_3, window_bounds = array<i64: 1, 128>}, {transform_indices = @transform_4, window_bounds = array<i64: 16, 256>}, {transform_indices = @transform_5, window_bounds = array<i64: 1, 256>}, {pipeline_mode = #tpu.pipeline_mode<synchronous>, transform_indices = @transform_6, window_bounds = array<i64: 1, 2>}]} {
    %c0_i32 = arith.constant 0 : i32
    %0 = arith.cmpi eq, %arg0, %c0_i32 : i32
    %1 = arith.extui %0 : i1 to i32
    %c0_i32_0 = arith.constant 0 : i32
    %2 = arith.cmpi ne, %1, %c0_i32_0 : i32
    scf.if %2 {
      %cst_21 = arith.constant 0.000000e+00 : f32
      %60 = vector.broadcast %cst_21 : f32 to vector<1x1xf32>
      %c0_22 = arith.constant 0 : index
      %c0_23 = arith.constant 0 : index
      %61 = vector.load %arg8[%c0_22, %c0_23] : memref<1x1xf32, #tpu.memory_space<vmem>>, vector<1x1xf32>
      tpu.vector_store %arg8[%c0_22, %c0_23], %60 {strides = array<i32>} : memref<1x1xf32, #tpu.memory_space<vmem>>, vector<1x1xf32>,
      %cst_24 = arith.constant 0.000000e+00 : f32
      %62 = vector.broadcast %cst_24 : f32 to vector<1x1xf32>
      %c0_25 = arith.constant 0 : index
      %c0_26 = arith.constant 0 : index
      %63 = vector.load %arg9[%c0_25, %c0_26] : memref<1x1xf32, #tpu.memory_space<vmem>>, vector<1x1xf32>
      tpu.vector_store %arg9[%c0_25, %c0_26], %62 {strides = array<i32>} : memref<1x1xf32, #tpu.memory_space<vmem>>, vector<1x1xf32>,
    } else {
    }
    %c0 = arith.constant 0 : index
    %c0_1 = arith.constant 0 : index
    %3 = vector.load %arg5[%c0, %c0_1] : memref<16x256xf32, #tpu.memory_space<vmem>>, vector<16x256xf32>
    %c0_2 = arith.constant 0 : index
    %c0_3 = arith.constant 0 : index
    %4 = vector.load %arg6[%c0_2, %c0_3] : memref<1x256xi32, #tpu.memory_space<vmem>>, vector<1x256xi32>
    %cst = arith.constant dense<0xFF800000> : vector<256xf32>
    %5 = vector.multi_reduction <maximumf>, %3, %cst [0] : vector<16x256xf32> to vector<256xf32>
    %6 = vector.shape_cast %5 : vector<256xf32> to vector<1x256xf32>
    %7 = vector.broadcast %6 : vector<1x256xf32> to vector<16x256xf32>
    %8 = arith.subf %3, %7 : vector<16x256xf32>
    %9 = math.exp %8 : vector<16x256xf32>
    %cst_4 = arith.constant dense<0.000000e+00> : vector<256xf32>
    %10 = vector.multi_reduction <add>, %9, %cst_4 [0] : vector<16x256xf32> to vector<256xf32>
    %11 = vector.shape_cast %10 : vector<256xf32> to vector<1x256xf32>
    %12 = math.log %11 : vector<1x256xf32>
    %13 = arith.addf %12, %6 : vector<1x256xf32>
    %14 = tpu.iota {dimensions = array<i32: 0>} : vector<16x256xi32>
    %15 = vector.broadcast %4 : vector<1x256xi32> to vector<16x256xi32>
    %16 = arith.cmpi eq, %14, %15 : vector<16x256xi32>
    %17 = arith.extui %16 : vector<16x256xi1> to vector<16x256xi32>
    %18 = arith.sitofp %17 : vector<16x256xi32> to vector<16x256xf32>
    %19 = arith.mulf %3, %18 : vector<16x256xf32>
    %cst_5 = arith.constant dense<0.000000e+00> : vector<256xf32>
    %20 = vector.multi_reduction <add>, %19, %cst_5 [0] : vector<16x256xf32> to vector<256xf32>
    %21 = vector.shape_cast %20 : vector<256xf32> to vector<1x256xf32>
    %22 = arith.subf %21, %13 : vector<1x256xf32>
    %cst_6 = arith.constant 0.000000e+00 : f32
    %23 = vector.broadcast %cst_6 : f32 to vector<1x256xf32>
    %c0_i32_7 = arith.constant 0 : i32
    %24 = vector.broadcast %c0_i32_7 : i32 to vector<1x256xi32>
    %25 = arith.cmpi eq, %4, %24 : vector<1x256xi32>
    %26 = arith.extui %25 : vector<1x256xi1> to vector<1x256xi32>
    %27 = arith.sitofp %26 : vector<1x256xi32> to vector<1x256xf32>
    %28 = arith.addf %23, %27 : vector<1x256xf32>
    %c1_i32 = arith.constant 1 : i32
    %29 = vector.broadcast %c1_i32 : i32 to vector<1x256xi32>
    %30 = arith.cmpi eq, %4, %29 : vector<1x256xi32>
    %31 = arith.extui %30 : vector<1x256xi1> to vector<1x256xi32>
    %32 = arith.sitofp %31 : vector<1x256xi32> to vector<1x256xf32>
    %33 = arith.addf %28, %32 : vector<1x256xf32>
    %c6_i32 = arith.constant 6 : i32
    %34 = vector.broadcast %c6_i32 : i32 to vector<1x256xi32>
    %35 = arith.cmpi eq, %4, %34 : vector<1x256xi32>
    %36 = arith.extui %35 : vector<1x256xi1> to vector<1x256xi32>
    %37 = arith.sitofp %36 : vector<1x256xi32> to vector<1x256xf32>
    %38 = arith.addf %33, %37 : vector<1x256xf32>
    %c10_i32 = arith.constant 10 : i32
    %39 = vector.broadcast %c10_i32 : i32 to vector<1x256xi32>
    %40 = arith.cmpi eq, %4, %39 : vector<1x256xi32>
    %41 = arith.extui %40 : vector<1x256xi1> to vector<1x256xi32>
    %42 = arith.sitofp %41 : vector<1x256xi32> to vector<1x256xf32>
    %43 = arith.addf %38, %42 : vector<1x256xf32>
    %c0_8 = arith.constant 0 : index
    %c0_9 = arith.constant 0 : index
    %44 = vector.load %arg8[%c0_8, %c0_9] : memref<1x1xf32, #tpu.memory_space<vmem>>, vector<1x1xf32>
    %cst_10 = arith.constant 0.000000e+00 : f32
    %45 = vector.broadcast %cst_10 : f32 to vector<1x256xf32>
    %46 = arith.subf %45, %22 : vector<1x256xf32>
    %47 = arith.mulf %46, %43 : vector<1x256xf32>
    %cst_11 = arith.constant dense<0.000000e+00> : vector<1xf32>
    %48 = vector.multi_reduction <add>, %47, %cst_11 [1] : vector<1x256xf32> to vector<1xf32>
    %49 = vector.shape_cast %48 : vector<1xf32> to vector<1x1xf32>
    %50 = arith.addf %44, %49 : vector<1x1xf32>
    %c0_12 = arith.constant 0 : index
    %c0_13 = arith.constant 0 : index
    %51 = vector.load %arg8[%c0_12, %c0_13] : memref<1x1xf32, #tpu.memory_space<vmem>>, vector<1x1xf32>
    tpu.vector_store %arg8[%c0_12, %c0_13], %50 {strides = array<i32>} : memref<1x1xf32, #tpu.memory_space<vmem>>, vector<1x1xf32>,
    %c0_14 = arith.constant 0 : index
    %c0_15 = arith.constant 0 : index
    %52 = vector.load %arg9[%c0_14, %c0_15] : memref<1x1xf32, #tpu.memory_space<vmem>>, vector<1x1xf32>
    %cst_16 = arith.constant dense<0.000000e+00> : vector<1xf32>
    %53 = vector.multi_reduction <add>, %43, %cst_16 [1] : vector<1x256xf32> to vector<1xf32>
    %54 = vector.shape_cast %53 : vector<1xf32> to vector<1x1xf32>
    %55 = arith.addf %52, %54 : vector<1x1xf32>
    %c0_17 = arith.constant 0 : index
    %c0_18 = arith.constant 0 : index
    %56 = vector.load %arg9[%c0_17, %c0_18] : memref<1x1xf32, #tpu.memory_space<vmem>>, vector<1x1xf32>
    tpu.vector_store %arg9[%c0_17, %c0_18], %55 {strides = array<i32>} : memref<1x1xf32, #tpu.memory_space<vmem>>, vector<1x1xf32>,
    %c0_i32_19 = arith.constant 0 : i32
    %57 = arith.cmpi eq, %arg0, %c0_i32_19 : i32
    %58 = arith.extui %57 : i1 to i32
    %c0_i32_20 = arith.constant 0 : i32
    %59 = arith.cmpi ne, %58, %c0_i32_20 : i32
    scf.if %59 {
      %c0_21 = arith.constant 0 : index
      %c0_22 = arith.constant 0 : index
      %60 = vector.load %arg1[%c0_21, %c0_22] : memref<1x128xf32, #tpu.memory_space<vmem>>, vector<1x128xf32>
      %c0_23 = arith.constant 0 : index
      %c0_24 = arith.constant 0 : index
      %61 = vector.load %arg2[%c0_23, %c0_24] : memref<1x128xf32, #tpu.memory_space<vmem>>, vector<1x128xf32>
      %62 = arith.subf %60, %61 : vector<1x128xf32>
      %c0_25 = arith.constant 0 : index
      %c0_26 = arith.constant 0 : index
      %63 = vector.load %arg3[%c0_25, %c0_26] : memref<1x128xf32, #tpu.memory_space<vmem>>, vector<1x128xf32>
      %c0_27 = arith.constant 0 : index
      %c0_28 = arith.constant 0 : index
      %64 = vector.load %arg4[%c0_27, %c0_28] : memref<1x128xf32, #tpu.memory_space<vmem>>, vector<1x128xf32>
      %65 = arith.subf %63, %64 : vector<1x128xf32>
      %66 = arith.mulf %62, %62 : vector<1x128xf32>
      %cst_29 = arith.constant dense<0.000000e+00> : vector<1xf32>
      %67 = vector.multi_reduction <add>, %66, %cst_29 [1] : vector<1x128xf32> to vector<1xf32>
      %68 = vector.shape_cast %67 : vector<1xf32> to vector<1x1xf32>
      %cst_30 = arith.constant 0.0196078438 : f32
      %69 = vector.broadcast %cst_30 : f32 to vector<1x1xf32>
      %70 = arith.mulf %68, %69 : vector<1x1xf32>
      %71 = arith.mulf %65, %65 : vector<1x128xf32>
      %cst_31 = arith.constant dense<0.000000e+00> : vector<1xf32>
      %72 = vector.multi_reduction <add>, %71, %cst_31 [1] : vector<1x128xf32> to vector<1xf32>
      %73 = vector.shape_cast %72 : vector<1xf32> to vector<1x1xf32>
      %cst_32 = arith.constant 0.0370370373 : f32
      %74 = vector.broadcast %cst_32 : f32 to vector<1x1xf32>
      %75 = arith.mulf %73, %74 : vector<1x1xf32>
      %76 = arith.addf %70, %75 : vector<1x1xf32>
      %c0_33 = arith.constant 0 : index
      %c0_34 = arith.constant 0 : index
      %77 = vector.load %arg9[%c0_33, %c0_34] : memref<1x1xf32, #tpu.memory_space<vmem>>, vector<1x1xf32>
      %cst_35 = arith.constant 0.000000e+00 : f32
      %78 = vector.broadcast %cst_35 : f32 to vector<1x1xf32>
      %79 = arith.cmpf ogt, %77, %78 : vector<1x1xf32>
      %c0_36 = arith.constant 0 : index
      %c0_37 = arith.constant 0 : index
      %80 = vector.load %arg8[%c0_36, %c0_37] : memref<1x1xf32, #tpu.memory_space<vmem>>, vector<1x1xf32>
      %cst_38 = arith.constant 1.000000e+00 : f32
      %81 = vector.broadcast %cst_38 : f32 to vector<1x1xf32>
      %82 = arith.maximumf %77, %81 : vector<1x1xf32>
      %83 = arith.divf %80, %82 : vector<1x1xf32>
      %cst_39 = arith.constant 0.000000e+00 : f32
      %84 = vector.broadcast %cst_39 : f32 to vector<1x1xf32>
      %85 = arith.select %79, %83, %84 : vector<1x1xi1>, vector<1x1xf32>
      %86 = tpu.concatenate %76, %85 in 1 : vector<1x1xf32>, vector<1x1xf32> -> vector<1x2xf32>
      %c0_40 = arith.constant 0 : index
      %c0_41 = arith.constant 0 : index
      %87 = vector.load %arg7[%c0_40, %c0_41] : memref<1x2xf32, #tpu.memory_space<vmem>>, vector<1x2xf32>
      tpu.vector_store %arg7[%c0_40, %c0_41], %86 {strides = array<i32>} : memref<1x2xf32, #tpu.memory_space<vmem>>, vector<1x2xf32>,
    } else {
    }
    return
  }
  func.func @transform_0(%arg0: i32) -> (i32, i32) {
    %c0_i32 = arith.constant 0 : i32
    %c0_i32_0 = arith.constant 0 : i32
    %c0_i32_1 = arith.constant 0 : i32
    return %c0_i32, %c0_i32_0 : i32, i32
  }
  func.func @transform_1(%arg0: i32) -> (i32, i32) {
    %c0_i32 = arith.constant 0 : i32
    %c0_i32_0 = arith.constant 0 : i32
    %c0_i32_1 = arith.constant 0 : i32
    return %c0_i32, %c0_i32_0 : i32, i32
  }
  func.func @transform_2(%arg0: i32) -> (i32, i32) {
    %c0_i32 = arith.constant 0 : i32
    %c0_i32_0 = arith.constant 0 : i32
    %c0_i32_1 = arith.constant 0 : i32
    return %c0_i32, %c0_i32_0 : i32, i32
  }
  func.func @transform_3(%arg0: i32) -> (i32, i32) {
    %c0_i32 = arith.constant 0 : i32
    %c0_i32_0 = arith.constant 0 : i32
    %c0_i32_1 = arith.constant 0 : i32
    return %c0_i32, %c0_i32_0 : i32, i32
  }
  func.func @transform_4(%arg0: i32) -> (i32, i32) {
    %c0_i32 = arith.constant 0 : i32
    %c0_i32_0 = arith.constant 0 : i32
    return %c0_i32, %arg0 : i32, i32
  }
  func.func @transform_5(%arg0: i32) -> (i32, i32) {
    %c0_i32 = arith.constant 0 : i32
    %c0_i32_0 = arith.constant 0 : i32
    return %c0_i32, %arg0 : i32, i32
  }
  func.func @transform_6(%arg0: i32) -> (i32, i32) {
    %c0_i32 = arith.constant 0 : i32
    %c0_i32_0 = arith.constant 0 : i32
    %c0_i32_1 = arith.constant 0 : i32
    return %c0_i32, %c0_i32_0 : i32, i32
  }
}

</mosaic_0001>

<bundles_post_ra>
// kernel: text_proxy_step.3
= control target key start
LH: loop header
LB: loop body
LE: loop exit
PB: predicated region body
PF: predicated region fallthrough
CT: control target
= control target key end

     0   :  { %v81_v0 = vlaneseq  ;;  %vm27_vm0 = vcmask 0   ;;  %v240_v4 = vmov 0.0   ;;  %vm156_vm5 = vcmask 1040384   ;;  %s385_s5 = inlined_call_operand.vmem [shape: s32[1,256], index: 5, kind: input, shape index: {}]   ;;  %s386_s4 = inlined_call_operand.vmem [shape: f32[16,256], index: 4, kind: input, shape index: {}]   ;;  %s387_s0 = inlined_call_operand.vmem [shape: f32[1,128], index: 0, kind: input, shape index: {}]   ;;  %s388_s1 = inlined_call_operand.vmem [shape: f32[1,128], index: 1, kind: input, shape index: {}]   ;;  %s389_s2 = inlined_call_operand.vmem [shape: f32[1,128], index: 2, kind: input, shape index: {}]   ;;  %s390_s3 = inlined_call_operand.vmem [shape: f32[1,128], index: 3, kind: input, shape index: {}]   ;;  %s391_s6 = inlined_call_operand.vmem [shape: f32[1,2], index: 6, kind: output, shape index: {}]  }
   0x1   :  { %v280_v1 = vld [vmem:[%s385_s5] sm:$0x3]  ;;  %v290_v3 = vld [vmem:[%s386_s4 + $0x8] sm:$0xff]  ;;  %29 = vst.msk [vmem:[#allocation3] sm:$0x1] %vm27_vm0, %v240_v4  ;;  %v304_v6 = vld [vmem:[%s386_s4 + $0x10] sm:$0xff] }
   0x2   :  { %v285_v2 = vld [vmem:[%s386_s4] sm:$0xff]  ;;  %28 = vst.msk [vmem:[#allocation2] sm:$0x1] %vm27_vm0, %v240_v4  ;;  %v296_v5 = vshrl.u32 %v81_v0, 7  ;;  %vm124_vm1 = vcmp.eq.s32.totalorder %v280_v1, 0  ;;  %vm128_vm2 = vcmp.eq.s32.totalorder %v280_v1, 1 }
   0x3   :  { %vm132_vm3 = vcmp.eq.s32.totalorder %v280_v1, 6  ;;  %v309_v7 = vld [vmem:[%s386_s4 + $0x18] sm:$0xff]  ;;  %v220_v8 = vsel %vm124_vm1, 1.0, %v240_v4  ;;  %v221_v9 = vsel %vm128_vm2, 1.0, %v240_v4  ;;  %vm136_vm4 = vcmp.eq.s32.totalorder %v280_v1, 10 }
   0x4   :  { %v222_v10 = vsel %vm132_vm3, 1.0, %v240_v4  ;;  %v176_v11 = vld [vmem:[%s387_s0] sm:$0x1]  ;;  %v131_v12 = vadd.f32 %v221_v9, %v220_v8  ;;  %v223_v14 = vsel %vm136_vm4, 1.0, %v240_v4  ;;  %v42_v15 = vmax.f32 %v290_v3, %v309_v7 }
   0x5   :  { %v177_v13 = vld [vmem:[%s388_s1] sm:$0x1]  ;;  %v35_v16 = vmax.f32 %v285_v2, %v304_v6  ;;  %v327_v19 = vsub.s32 0, %v296_v5  ;;  %v90_v23 = vsub.s32 1, %v296_v5  ;;  %v83_v54 = vadd.s32 8, %v296_v5 }
   0x6   :  { %v178_v17 = vsub.f32 %v176_v11, %v177_v13  ;;  %v135_v18 = vadd.f32 %v222_v10, %v131_v12  ;;  %v179_v21 = vld [vmem:[%s389_s2] sm:$0x1]  ;;  %v43_v25 = vrot.slane %v42_v15, 4  ;;  %s241_s2 = smov 1   ;;  %vm208_vm11 = vcmask 7168  }
   0x7   :  { %v36_v20 = vrot.slane %v35_v16, 4  ;;  %v180_v22 = vld [vmem:[%s390_s3] sm:$0x1]  ;;  %v87_v55 = vrot.slane %v280_v1, %v327_v19  ;;  %v91_v56 = vrot.slane %v280_v1, %v90_v23  ;;  %vm210_vm12 = vcmask 8192  }
   0x8   :  { %v139_v24 = vadd.f32 %v223_v14, %v135_v18  ;;  %v182_v26 = vmul.f32 %v178_v17, %v178_v17  ;;  %v181_v29 = vsub.f32 %v179_v21, %v180_v22  ;;  %v44_v33 = vmax.f32 %v42_v15, %v43_v25 }
   0x9   :  { %v37_v30 = vmax.f32 %v35_v16, %v36_v20  ;;  %vm92_vm6 = vcmp.eq.s32.totalorder %v296_v5, %v87_v55  ;;  %vm94_vm7 = vcmp.eq.s32.totalorder %v83_v54, %v87_v55  ;;  %vm93_vm8 = vcmp.eq.s32.totalorder %v296_v5, %v91_v56 }
   0xa   :  { %v337_v27 = vrot.slane %v139_v24, %v327_v19  ;;  %v339_v28 = vrot.slane %v139_v24, %v90_v23  ;;  %v183_v34 = vsel %vm156_vm5, %v182_v26, 0.0  ;;  %v45_v37 = vrot.slane %v44_v33, 2 }
   0xb   :  { %v38_v36 = vrot.slane %v37_v30, 2  ;;  %184 = vadd.xlane.f32.xlu1 %v183_v34  ;;  %v187_v38 = vmul.f32 %v181_v29, %v181_v29  ;;  %vm95_vm9 = vcmp.eq.s32.totalorder %v83_v54, %v91_v56  ;;  %v216_v57 = vsel %vm92_vm6, 1.0, %v240_v4  ;;  %v140_v56 = vld [vmem:[#allocation2] sm:$0x1] }
   0xc   :  { %v166_v31 = vsel %vm156_vm5, %v337_v27, 0.0  ;;  %v167_v32 = vsel %vm156_vm5, %v339_v28, 0.0  ;;  %v46_v40 = vmax.f32 %v44_v33, %v45_v37  ;;  %v218_v58 = vsel %vm94_vm7, 1.0, %v240_v4 }
   0xd   :  { %v168_v35 = vadd.f32 %v167_v32, %v166_v31  ;;  %v39_v39 = vmax.f32 %v37_v30, %v38_v36  ;;  %v188_v41 = vsel %vm156_vm5, %v187_v38, 0.0  ;;  %v217_v59 = vsel %vm93_vm8, 1.0, %v240_v4 }
   0xe   :  { %v47_v43 = vrot.slane %v46_v40, 1  ;;  %v219_v60 = vsel %vm95_vm9, 1.0, %v240_v4  ;;  %v104_v62 = vmul.f32 %v216_v57, %v285_v2  ;;  %v106_v63 = vmul.f32 %v218_v58, %v304_v6 }
   0xf   :  { %169 = vadd.xlane.f32.xlu0 %v168_v35  ;;  %v40_v42 = vrot.slane %v39_v39, 1  ;;  %189 = vadd.xlane.f32.xlu1 %v188_v41  ;;  %v105_v1 = vmul.f32 %v217_v59, %v290_v3  ;;  %v107_v8 = vmul.f32 %v219_v60, %v309_v7 }
  0x10   :  { %v349_v45 = vmax.f32 %v46_v40, %v47_v43  ;;  %v108_v12 = vadd.f32 %v106_v63, %v104_v62 }
  0x11   :  { %v347_v44 = vmax.f32 %v39_v39, %v40_v42  ;;  %v115_v13 = vadd.f32 %v107_v8, %v105_v1 }
  0x12   :  { %v50_v48 = vsub.f32 %v290_v3, %v349_v45  ;;  %v52_v49 = vsub.f32 %v309_v7, %v349_v45  ;;  %v109_v17 = vrot.slane %v108_v12, 4 }
  0x13   :  { %v49_v46 = vsub.f32 %v285_v2, %v347_v44  ;;  %v51_v47 = vsub.f32 %v304_v6, %v347_v44  ;;  %v116_v2 = vrot.slane %v115_v13, 4 }
  0x14   :  { %v55_v52 = vmul.f32 1.442695, %v50_v48  ;;  %v59_v53 = vmul.f32 1.442695, %v52_v49  ;;  %v110_v22 = vadd.f32 %v109_v17, %v108_v12 }
  0x15   :  { %v53_v50 = vmul.f32 1.442695, %v49_v46  ;;  %v57_v51 = vmul.f32 1.442695, %v51_v47  ;;  %v117_v23 = vadd.f32 %v116_v2, %v115_v13 }
  0x16   :  { %v111_v26 = vrot.slane %v110_v22, 2 }
  0x17   :  { %226 = vpow2.f32 %v53_v50  ;;  %v118_v29 = vrot.slane %v117_v23, 2 }
  0x18   :  { %228 = vpow2.f32 %v55_v52  ;;  %v112_v30 = vadd.f32 %v111_v26, %v110_v22 }
  0x19   :  { %230 = vpow2.f32 %v57_v51  ;;  %v119_v31 = vadd.f32 %v118_v29, %v117_v23 }
  0x1a   :  { %232 = vpow2.f32 %v59_v53  ;;  %v113_v32 = vrot.slane %v112_v30, 1  ;;  %v165_v53 = vld [vmem:[#allocation3] sm:$0x1] }
  0x1b   :  { %v120_v33 = vrot.slane %v119_v31, 1 }
  0x1c   :  { %v114_v37 = vadd.f32 %v113_v32, %v112_v30 }
  0x1d   :  { %v121_v39 = vadd.f32 %v120_v33, %v119_v31 }
  0x21   :  { %v227_v61 = vpop.eup %226 }
  0x22   :  { %v229_v0 = vpop.eup %228 }
  0x23   :  { %v231_v5 = vpop.eup %230 }
  0x24   :  { %v233_v9 = vpop.eup %232  ;;  %v61_v10 = vadd.f32 %v231_v5, %v227_v61 }
  0x25   :  { %v68_v11 = vadd.f32 %v233_v9, %v229_v0 }
  0x26   :  { %v62_v14 = vrot.slane %v61_v10, 4 }
  0x27   :  { %v69_v15 = vrot.slane %v68_v11, 4 }
  0x28   :  { %v63_v16 = vadd.f32 %v62_v14, %v61_v10 }
  0x29   :  { %v70_v4 = vadd.f32 %v69_v15, %v68_v11 }
  0x2a   :  { %v64_v18 = vrot.slane %v63_v16, 2 }
  0x2b   :  { %v71_v20 = vrot.slane %v70_v4, 2 }
  0x2c   :  { %v65_v6 = vadd.f32 %v64_v18, %v63_v16 }
  0x2d   :  { %v72_v21 = vadd.f32 %v71_v20, %v70_v4 }
  0x2e   :  { %v66_v3 = vrot.slane %v65_v6, 1 }
  0x2f   :  { %v73_v7 = vrot.slane %v72_v21, 1 }
  0x30   :  { %v67_v24 = vadd.f32 %v66_v3, %v65_v6 }
  0x31   :  { %v74_v25 = vadd.f32 %v73_v7, %v72_v21 }
  0x32   :  { %234 = vlog2.f32 %v67_v24 }
  0x33   :  { %236 = vlog2.f32 %v74_v25 }
  0x3c   :  { %v235_v34 = vpop.eup %234 }
  0x3d   :  { %v237_v35 = vpop.eup %236  ;;  %v76_v36 = vmul.f32 0.6931472, %v235_v34 }
  0x3e   :  { %v78_v38 = vmul.f32 0.6931472, %v237_v35 }
  0x3f   :  { %v79_v40 = vadd.f32 %v76_v36, %v347_v44 }
  0x40   :  { %v80_v41 = vadd.f32 %v78_v38, %v349_v45 }
  0x41   :  { %v122_v42 = vsub.f32 %v114_v37, %v79_v40 }
  0x42   :  { %v123_v43 = vsub.f32 %v121_v39, %v80_v41 }
  0x43   :  { %v141_v46 = vsub.f32 0.0, %v122_v42 }
  0x44   :  { %v142_v47 = vsub.f32 0.0, %v123_v43 }
  0x45   :  { %v154_v48 = vmul.f32 %v337_v27, %v141_v46 }
  0x46   :  { %v155_v49 = vmul.f32 %v339_v28, %v142_v47 }
  0x47   :  { %v157_v50 = vsel %vm156_vm5, %v154_v48, 0.0 }
  0x48   :  { %v158_v51 = vsel %vm156_vm5, %v155_v49, 0.0 }
  0x49   :  { %v159_v52 = vadd.f32 %v158_v51, %v157_v50 }
  0x4b   :  { %160 = vadd.xlane.f32.xlu0 %v159_v52 }
  0x98   :  { %v185_v62 = vpop.xlane.xlu1 %184 }
  0x99   :  { %v186_v0 = vmul.f32 0.019607844, %v185_v62 }
  0x9c   :  { %v170_v54 = vpop.xlane.xlu0 %169  ;;  %v190_v63 = vpop.xlane.xlu1 %189 }
  0x9d   :  { %v171_v55 = vadd.f32 %v170_v54, %v165_v53  ;;  %v191_v1 = vmul.f32 0.037037037, %v190_v63 }
  0x9f   :  { %172 = vst.msk [vmem:[#allocation3] sm:$0x1] %vm27_vm0, %v171_v55  ;;  %v192_v8 = vadd.f32 %v191_v1, %v186_v0 }
  0xa6   :  { %v193_v44 = vld [vmem:[#allocation3] sm:$0x1] }
  0xa7   :  { %v196_v45 = vmax.f32 %v193_v44, 1.0  ;;  %vm194_vm10 = vcmp.gt.f32.partialorder %v193_v44, 0.0 }
  0xa9   :  { %238 = vrcp.f32 %v196_v45 }
  0xb3   :  { %v239_v27 = vpop.eup %238 }
  0xd8   :  { %v161_v57 = vpop.xlane.xlu0 %160 }
  0xd9   :  { %v162_v58 = vadd.f32 %v161_v57, %v140_v56 }
  0xdb   :  { %164 = vst.msk [vmem:[#allocation2] sm:$0x1] %vm27_vm0, %v162_v58 }
  0xe2   :  { %v195_v28 = vld [vmem:[#allocation2] sm:$0x1] }
  0xe3   :  { %v198_v59 = vmul.f32 %v239_v27, %v195_v28 }
  0xe5   :  { %v199_v60 = vsel %vm194_vm10, %v198_v59, 0.0 }
  0xe6   :  { %v204_v61 = vrot.slane %v199_v60, %v327_v19 }
  0xe8   :  { %205 = vrot.lane.b32.xlu0 %v204_v61, %s241_s2 }
 0x15a   :  { %v206_v5 = vpop.permute.xlu0 %205 }
 0x15b   :  { %v209_v9 = vsel %vm208_vm11, %v192_v8, %v206_v5 }
 0x15c   :  { %211 = vst.msk [vmem:[%s391_s6] sm:$0x1] %vm210_vm12, %v209_v9 }

// kernel: text_proxy_step.2
= control target key start
LH: loop header
LB: loop body
LE: loop exit
PB: predicated region body
PF: predicated region fallthrough
CT: control target
= control target key end

     0   :  { %s2031_s12 = smov 0   ;;  %s2469_s0 = inlined_call_operand.vmem [shape: bf16[192,32], index: 0, kind: input, shape index: {}]   ;;  %s2470_s1 = inlined_call_operand.vmem [shape: bf16[256,32], index: 1, kind: input, shape index: {}]   ;;  %s2471_s2 = inlined_call_operand.vmem [shape: bf16[32,256], index: 2, kind: input, shape index: {}]   ;;  %s2472_s3 = inlined_call_operand.vmem [shape: f32[6,256,256], index: 3, kind: output, shape index: {}]  }
   0x1 LB: > { %s1742_s13 = sadd.s32 4294967295, %s2008_s12   ;;  %p1746_p0 = scmp.ge.s32.totalorder %s2008_s12, 1  ;;  %s2008_s12 = sphi %s2031_s12, %s13_s12  }
   0x2   : > { %p138_p1 = scmp.lt.s32.totalorder %s2008_s12, 3 }
   0x4   : > { %p139_p2 = pnand %p1746_p0, %p138_p1 }
   0x5   : > { %v1974_v0 = vld [vmem:[%s2471_s2 + $0x4] ss:$8 sps:$4 sm:$0xff] (!%p139_p2)   ;;  %s163_s16 = smul.u32 (!%p139_p2), 12, %s1742_s13  ;;  %v1976_v1 = vld [vmem:[%s2471_s2] ss:$8 sps:$4 sm:$0xff] (!%p139_p2)   ;;  %v2010_v2 = vmov (!%p139_p2), 0  }
   0x6   : > { %142 = sbr.rel (%p139_p2) target bundleno = 676 (0x2a4), region = 32  ;;  %326 = vmatprep.mubr.bf16.mxu0 (!%p139_p2), %v2010_v2  ;;  %609 = vmatprep.mubr.bf16.mxu1 (!%p139_p2), %v2010_v2  ;;  %v1977_v3 = vld [vmem:[%s2471_s2 + $0x14] ss:$8 sps:$4 sm:$0xff] (!%p139_p2)   ;;  %v1979_v4 = vld [vmem:[%s2471_s2 + $0x10] ss:$8 sps:$4 sm:$0xff] (!%p139_p2)   ;;  %vm275_vm0 = vcmask (!%p139_p2), 261120  }
   0x7   : > { %294 = vmatprep.subr.bf16.mxu0 (!%p139_p2), %v1974_v0  ;;  %p164_p3 = scmp.lt.s32.totalorder (!%p139_p2), %s163_s16, 23  ;;  %v2073_v23 = vld [vmem:[%s2470_s1] sm:$0xff] (!%p139_p2)   ;;  %v2078_v24 = vld [vmem:[%s2470_s1 + $0x28] sm:$0xff] (!%p139_p2)   ;;  %v2089_v31 = vld [vmem:[%s2470_s1 + $0x30] sm:$0xff] (!%p139_p2)   ;;  %s169_s7 = smul.u32 (!%p139_p2), 3, %s1742_s13 }
   0x8   : > { %295 = vmatpush1.bf16.msra.mxu0 (!%p139_p2), %v1976_v1  ;;  %v2094_v32 = vld [vmem:[%s2470_s1 + $0x8] sm:$0xff] (!%p139_p2)   ;;  %v2105_v39 = vld [vmem:[%s2470_s1 + $0x38] sm:$0xff] (!%p139_p2)   ;;  %v2110_v40 = vld [vmem:[%s2470_s1 + $0x10] sm:$0xff] (!%p139_p2)  }
   0x9   : > { %296 = vmatprep.subr.bf16.mxu0 (!%p139_p2), %v1977_v3  ;;  %v2121_v47 = vld [vmem:[%s2470_s1 + $0x40] sm:$0xff] (!%p139_p2)   ;;  %v1998_v48 = vld [vmem:[%s2470_s1 + $0x18] sm:$0xff] (!%p139_p2)   ;;  %v2134_v55 = vld [vmem:[%s2470_s1 + $0x48] sm:$0xff] (!%p139_p2)   ;;  %p170_p4 = scmp.lt.s32.totalorder (!%p139_p2), %s169_s7, 5 }
   0xa   : > { %v2000_v56 = vld [vmem:[%s2470_s1 + $0x20] sm:$0xff] (!%p139_p2)   ;;  %v2147_v57 = vld [vmem:[%s2470_s1 + $0x50] sm:$0xff] (!%p139_p2)   ;;  %v2158_v58 = vld [vmem:[%s2470_s1 + $0x58] sm:$0xff] (!%p139_p2)  }
   0xb   : > { %v2169_v59 = vld [vmem:[%s2470_s1 + $0x60] sm:$0xff] (!%p139_p2)   ;;  %v1997_v60 = vld [vmem:[%s2470_s1 + $0x68] sm:$0xff] (!%p139_p2)   ;;  %v1999_v61 = vld [vmem:[%s2470_s1 + $0x70] sm:$0xff] (!%p139_p2)  }
   0xc   : > { %297 = vmatpush1.bf16.msra.mxu0 (!%p139_p2), %v1979_v4  ;;  %v2001_v62 = vld [vmem:[%s2470_s1 + $0x78] sm:$0xff] (!%p139_p2)  }
   0xd   : > { %s2474_s16 = smov (!%p164_p3, %s163_s16), 23  ;;  %s2476_s7 = smov (!%p170_p4, %s169_s7), 5 }
   0xe   : > { %s1747_s23 = sshll.u32 %s2474_s16, 2  ;;  %s1960_s8 = sshll.u32 %s2476_s7, 9 }
   0xf   : > { %s167_s26 = scalar_lea.vmem %s2469_s0, %s1747_s23  ;;  %s2272_s10 = scalar_lea.vmem %s2472_s3, %s1960_s8 }
  0x10   : > { %v1980_v5 = vld [vmem:[%s167_s26] sm:$0xff]   ;;  %v1981_v6 = vld [vmem:[%s167_s26 + $0x8] sm:$0xff]   ;;  %v1982_v7 = vld [vmem:[%s167_s26 + $0x10] sm:$0xff]  }
  0x11   : > { %1760 = vmatmul.mubr.msk.bf16.vlgmr.msra.gmra.mrb[0].mxu0 %vm275_vm0, %v1980_v5  ;;  %v1983_v8 = vld [vmem:[%s167_s26 + $0x18] sm:$0xff]   ;;  %v1984_v9 = vld [vmem:[%s167_s26 + $0x20] sm:$0xff]   ;;  %v1985_v10 = vld [vmem:[%s167_s26 + $0x28] sm:$0xff]  }
  0x12   : > { %336 = vmatprep.mubr.bf16.mxu0 %v2010_v2 }
  0x19   : > { %1761 = vmatmul.mubr.msk.bf16.gmra.mrb[4].mxu0 %vm275_vm0, %v1981_v6 }
  0x1a   : > { %346 = vmatprep.mubr.bf16.mxu0 %v2010_v2 }
  0x21   : > { %1762 = vmatmul.mubr.msk.bf16.gmra.mrb[8].mxu0 %vm275_vm0, %v1982_v7 }
  0x22   : > { %356 = vmatprep.mubr.bf16.mxu0 %v2010_v2 }
  0x29   : > { %1763 = vmatmul.mubr.msk.bf16.gmra.mrb[12].mxu0 %vm275_vm0, %v1983_v8 }
  0x2a   : > { %366 = vmatprep.mubr.bf16.mxu0 %v2010_v2 }
  0x31   : > { %1764 = vmatmul.mubr.msk.bf16.gmra.mrb[16].mxu0 %vm275_vm0, %v1984_v9 }
  0x32   : > { %376 = vmatprep.mubr.bf16.mxu0 %v2010_v2 }
  0x39   : > { %1765 = vmatmul.mubr.msk.bf16.gmra.mrb[20].mxu0 %vm275_vm0, %v1985_v10 }
  0x3a   : > { %559 = vmatprep.mubr.bf16.mxu0 %v2010_v2 }
  0xe4   : > { %v328_v11 = vpop.f32.mrb[0].mxu0 }
  0xe5   : > { %v330_v12 = vpop.f32.mrb[1].mxu0 }
  0xe6   : > { %v332_v13 = vpop.f32.mrb[2].mxu0 }
  0xe7   : > { %v387_v14 = vpack.c.bf16 %v332_v13, %v328_v11  ;;  %v334_v15 = vpop.f32.mrb[3].mxu0 }
  0xe8   : > { %v388_v16 = vpack.c.bf16 %v334_v15, %v330_v12 }
  0xea   : > { %527 = vmatprep.subr.bf16.mxu0 %v388_v16  ;;  %1961 = vmatprep.subr.bf16.mxu1 %v388_v16 }
  0xeb   : > { %528 = vmatpush1.bf16.msra.mxu0 %v387_v14  ;;  %1963 = vmatpush1.bf16.msra.mxu1 %v387_v14 }
  0xec   : > { %v338_v17 = vpop.f32.mrb[4].mxu0 }
  0xed   : > { %v340_v18 = vpop.f32.mrb[5].mxu0 }
  0xee   : > { %v342_v19 = vpop.f32.mrb[6].mxu0 }
  0xef   : > { %v389_v20 = vpack.c.bf16 %v342_v19, %v338_v17  ;;  %v344_v21 = vpop.f32.mrb[7].mxu0 }
  0xf0   : > { %v390_v22 = vpack.c.bf16 %v344_v21, %v340_v18 }
  0xf2   : > { %529 = vmatprep.subr.bf16.mxu0 %v390_v22  ;;  %1962 = vmatprep.subr.bf16.mxu1 %v390_v22 }
  0xf3   : > { %530 = vmatpush1.bf16.msra.mxu0 %v389_v20  ;;  %1964 = vmatpush1.bf16.msra.mxu1 %v389_v20 }
  0xf4   : > { %v348_v25 = vpop.f32.mrb[8].mxu0 }
  0xf5   : > { %v350_v26 = vpop.f32.mrb[9].mxu0 }
  0xf6   : > { %v352_v27 = vpop.f32.mrb[10].mxu0  ;;  %1782 = vmatmul.mubr.msk.bf16.vlgmr.msra.gmra.mrb[24].mxu0 %vm275_vm0, %v2073_v23  ;;  %1787 = vmatmul.mubr.msk.bf16.vlgmr.msra.gmra.mrb[0].mxu1 %vm275_vm0, %v2078_v24 }
  0xf7   : > { %v391_v28 = vpack.c.bf16 %v352_v27, %v348_v25  ;;  %v354_v29 = vpop.f32.mrb[11].mxu0  ;;  %619 = vmatprep.mubr.bf16.mxu1 %v2010_v2  ;;  %569 = vmatprep.mubr.bf16.mxu0 %v2010_v2 }
  0xf8   : > { %v392_v30 = vpack.c.bf16 %v354_v29, %v350_v26 }
  0xfa   : > { %912 = vmatprep.subr.bf16.mxu0 %v392_v30 }
  0xfb   : > { %913 = vmatpush1.bf16.msra.mxu0 %v391_v28 }
  0xfc   : > { %v358_v33 = vpop.f32.mrb[12].mxu0 }
  0xfd   : > { %v360_v34 = vpop.f32.mrb[13].mxu0 }
  0xfe   : > { %v362_v35 = vpop.f32.mrb[14].mxu0  ;;  %1788 = vmatmul.mubr.msk.bf16.gmra.mrb[4].mxu1 %vm275_vm0, %v2089_v31  ;;  %1783 = vmatmul.mubr.msk.bf16.gmra.mrb[28].mxu0 %vm275_vm0, %v2094_v32 }
  0xff   : > { %v393_v36 = vpack.c.bf16 %v362_v35, %v358_v33  ;;  %v364_v37 = vpop.f32.mrb[15].mxu0  ;;  %629 = vmatprep.mubr.bf16.mxu1 %v2010_v2  ;;  %579 = vmatprep.mubr.bf16.mxu0 %v2010_v2 }
 0x100   : > { %v394_v38 = vpack.c.bf16 %v364_v37, %v360_v34 }
 0x102   : > { %914 = vmatprep.subr.bf16.mxu0 %v394_v38 }
 0x103   : > { %915 = vmatpush1.bf16.msra.mxu0 %v393_v36 }
 0x104   : > { %v368_v41 = vpop.f32.mrb[16].mxu0 }
 0x105   : > { %v370_v42 = vpop.f32.mrb[17].mxu0 }
 0x106   : > { %v372_v43 = vpop.f32.mrb[18].mxu0  ;;  %1789 = vmatmul.mubr.msk.bf16.gmra.mrb[8].mxu1 %vm275_vm0, %v2105_v39  ;;  %1784 = vmatmul.mubr.msk.bf16.gmra.mrb[32].mxu0 %vm275_vm0, %v2110_v40 }
 0x107   : > { %v395_v44 = vpack.c.bf16 %v372_v43, %v368_v41  ;;  %v374_v45 = vpop.f32.mrb[19].mxu0  ;;  %639 = vmatprep.mubr.bf16.mxu1 %v2010_v2  ;;  %589 = vmatprep.mubr.bf16.mxu0 %v2010_v2 }
 0x108   : > { %v396_v46 = vpack.c.bf16 %v374_v45, %v370_v42 }
 0x10a   : > { %1298 = vmatprep.subr.bf16.mxu1 %v396_v46 }
 0x10b   : > { %1299 = vmatpush1.bf16.msra.mxu1 %v395_v44 }
 0x10c   : > { %v378_v49 = vpop.f32.mrb[20].mxu0 }
 0x10d   : > { %v380_v50 = vpop.f32.mrb[21].mxu0 }
 0x10e   : > { %1790 = vmatmul.mubr.msk.bf16.gmra.mrb[12].mxu1 %vm275_vm0, %v2121_v47  ;;  %v382_v51 = vpop.f32.mrb[22].mxu0  ;;  %1785 = vmatmul.mubr.msk.bf16.gmra.mrb[36].mxu0 %vm275_vm0, %v1998_v48 }
 0x10f   : > { %649 = vmatprep.mubr.bf16.mxu1 %v2010_v2  ;;  %v397_v52 = vpack.c.bf16 %v382_v51, %v378_v49  ;;  %v384_v53 = vpop.f32.mrb[23].mxu0  ;;  %599 = vmatprep.mubr.bf16.mxu0 %v2010_v2 }
 0x110   : > { %v398_v54 = vpack.c.bf16 %v384_v53, %v380_v50 }
 0x112   : > { %1300 = vmatprep.subr.bf16.mxu1 %v398_v54 }
 0x113   : > { %1301 = vmatpush1.bf16.msra.mxu1 %v397_v52 }
 0x116   : > { %1791 = vmatmul.mubr.msk.bf16.gmra.mrb[16].mxu1 %vm275_vm0, %v2134_v55  ;;  %1786 = vmatmul.mubr.msk.bf16.gmra.mrb[40].mxu0 %vm275_vm0, %v2000_v56 }
 0x117   : > { %659 = vmatprep.mubr.bf16.mxu1 %v2010_v2  ;;  %944 = vmatprep.mubr.bf16.mxu0 %v2010_v2 }
 0x11e   : > { %1792 = vmatmul.mubr.msk.bf16.gmra.mrb[20].mxu1 %vm275_vm0, %v2147_v57  ;;  %1798 = vmatmul.mubr.msk.bf16.vlgmr.msra.gmra.mrb[44].mxu0 %vm275_vm0, %v2073_v23 }
 0x11f   : > { %669 = vmatprep.mubr.bf16.mxu1 %v2010_v2  ;;  %954 = vmatprep.mubr.bf16.mxu0 %v2010_v2 }
 0x126   : > { %1793 = vmatmul.mubr.msk.bf16.gmra.mrb[24].mxu1 %vm275_vm0, %v2158_v58  ;;  %1799 = vmatmul.mubr.msk.bf16.gmra.mrb[48].mxu0 %vm275_vm0, %v2094_v32 }
 0x127   : > { %679 = vmatprep.mubr.bf16.mxu1 %v2010_v2  ;;  %964 = vmatprep.mubr.bf16.mxu0 %v2010_v2 }
 0x12e   : > { %1794 = vmatmul.mubr.msk.bf16.gmra.mrb[28].mxu1 %vm275_vm0, %v2169_v59  ;;  %1800 = vmatmul.mubr.msk.bf16.gmra.mrb[52].mxu0 %vm275_vm0, %v2110_v40 }
 0x12f   : > { %689 = vmatprep.mubr.bf16.mxu1 %v2010_v2  ;;  %974 = vmatprep.mubr.bf16.mxu0 %v2010_v2 }
 0x136   : > { %1795 = vmatmul.mubr.msk.bf16.gmra.mrb[32].mxu1 %vm275_vm0, %v1997_v60  ;;  %1801 = vmatmul.mubr.msk.bf16.gmra.mrb[56].mxu0 %vm275_vm0, %v1998_v48 }
 0x137   : > { %699 = vmatprep.mubr.bf16.mxu1 %v2010_v2  ;;  %984 = vmatprep.mubr.bf16.mxu0 %v2010_v2 }
 0x13e   : > { %1796 = vmatmul.mubr.msk.bf16.gmra.mrb[36].mxu1 %vm275_vm0, %v1999_v61  ;;  %1802 = vmatmul.mubr.msk.bf16.gmra.mrb[60].mxu0 %vm275_vm0, %v2000_v56 }
 0x13f   : > { %709 = vmatprep.mubr.bf16.mxu1 %v2010_v2  ;;  %994 = vmatprep.mubr.bf16.mxu0 %v2010_v2 }
 0x146   : > { %1797 = vmatmul.mubr.msk.bf16.gmra.mrb[40].mxu1 %vm275_vm0, %v2001_v62  ;;  %1803 = vmatmul.mubr.msk.bf16.gmra.mrb[64].mxu0 %vm275_vm0, %v2078_v24 }
 0x147   : > { %1330 = vmatprep.mubr.bf16.mxu1 %v2010_v2  ;;  %1004 = vmatprep.mubr.bf16.mxu0 %v2010_v2 }
 0x14e   : > { %1878 = vmatmul.mubr.msk.bf16.vlgmr.msra.gmra.mrb[44].mxu1 %vm275_vm0, %v2073_v23  ;;  %1804 = vmatmul.mubr.msk.bf16.gmra.mrb[68].mxu0 %vm275_vm0, %v2089_v31 }
 0x14f   : > { %1340 = vmatprep.mubr.bf16.mxu1 %v2010_v2  ;;  %1014 = vmatprep.mubr.bf16.mxu0 %v2010_v2 }
 0x156   : > { %1879 = vmatmul.mubr.msk.bf16.gmra.mrb[48].mxu1 %vm275_vm0, %v2094_v32  ;;  %1805 = vmatmul.mubr.msk.bf16.gmra.mrb[72].mxu0 %vm275_vm0, %v2105_v39 }
 0x157   : > { %1350 = vmatprep.mubr.bf16.mxu1 %v2010_v2  ;;  %1024 = vmatprep.mubr.bf16.mxu0 %v2010_v2 }
 0x15e   : > { %1880 = vmatmul.mubr.msk.bf16.gmra.mrb[52].mxu1 %vm275_vm0, %v2110_v40  ;;  %1806 = vmatmul.mubr.msk.bf16.gmra.mrb[76].mxu0 %vm275_vm0, %v2121_v47 }
 0x15f   : > { %1360 = vmatprep.mubr.bf16.mxu1 %v2010_v2  ;;  %1034 = vmatprep.mubr.bf16.mxu0 %v2010_v2 }
 0x166   : > { %1881 = vmatmul.mubr.msk.bf16.gmra.mrb[56].mxu1 %vm275_vm0, %v1998_v48  ;;  %1807 = vmatmul.mubr.msk.bf16.gmra.mrb[80].mxu0 %vm275_vm0, %v2134_v55 }
 0x167   : > { %1370 = vmatprep.mubr.bf16.mxu1 %v2010_v2  ;;  %1044 = vmatprep.mubr.bf16.mxu0 %v2010_v2 }
 0x16e   : > { %1882 = vmatmul.mubr.msk.bf16.gmra.mrb[60].mxu1 %vm275_vm0, %v2000_v56  ;;  %1808 = vmatmul.mubr.msk.bf16.gmra.mrb[84].mxu0 %vm275_vm0, %v2147_v57 }
 0x16f   : > { %1380 = vmatprep.mubr.bf16.mxu1 %v2010_v2  ;;  %1054 = vmatprep.mubr.bf16.mxu0 %v2010_v2 }
 0x176   : > { %1883 = vmatmul.mubr.msk.bf16.gmra.mrb[64].mxu1 %vm275_vm0, %v2078_v24  ;;  %1809 = vmatmul.mubr.msk.bf16.gmra.mrb[88].mxu0 %vm275_vm0, %v2158_v58 }
 0x177   : > { %1390 = vmatprep.mubr.bf16.mxu1 %v2010_v2  ;;  %1064 = vmatprep.mubr.bf16.mxu0 %v2010_v2 }
 0x17e   : > { %1884 = vmatmul.mubr.msk.bf16.gmra.mrb[68].mxu1 %vm275_vm0, %v2089_v31  ;;  %1810 = vmatmul.mubr.msk.bf16.gmra.mrb[92].mxu0 %vm275_vm0, %v2169_v59 }
 0x17f   : > { %1400 = vmatprep.mubr.bf16.mxu1 %v2010_v2  ;;  %1074 = vmatprep.mubr.bf16.mxu0 %v2010_v2 }
 0x186   : > { %1885 = vmatmul.mubr.msk.bf16.gmra.mrb[72].mxu1 %vm275_vm0, %v2105_v39  ;;  %1811 = vmatmul.mubr.msk.bf16.gmra.mrb[96].mxu0 %vm275_vm0, %v1997_v60 }
 0x187   : > { %1410 = vmatprep.mubr.bf16.mxu1 %v2010_v2  ;;  %1084 = vmatprep.mubr.bf16.mxu0 %v2010_v2 }
 0x18e   : > { %1886 = vmatmul.mubr.msk.bf16.gmra.mrb[76].mxu1 %vm275_vm0, %v2121_v47  ;;  %1812 = vmatmul.mubr.msk.bf16.gmra.mrb[100].mxu0 %vm275_vm0, %v1999_v61 }
 0x18f   : > { %1420 = vmatprep.mubr.bf16.mxu1 %v2010_v2  ;;  %1094 = vmatprep.mubr.bf16.mxu0 %v2010_v2 }
 0x196   : > { %1887 = vmatmul.mubr.msk.bf16.gmra.mrb[80].mxu1 %vm275_vm0, %v2134_v55  ;;  %1813 = vmatmul.mubr.msk.bf16.gmra.mrb[104].mxu0 %vm275_vm0, %v2001_v62 }
 0x197   : > { %1430 = vmatprep.mubr.bf16.mxu1 %v2010_v2 }
 0x19e   : > { %1888 = vmatmul.mubr.msk.bf16.gmra.mrb[84].mxu1 %vm275_vm0, %v2147_v57 }
 0x19f   : > { %1440 = vmatprep.mubr.bf16.mxu1 %v2010_v2 }
 0x1a6   : > { %1889 = vmatmul.mubr.msk.bf16.gmra.mrb[88].mxu1 %vm275_vm0, %v2158_v58 }
 0x1a7   : > { %1450 = vmatprep.mubr.bf16.mxu1 %v2010_v2 }
 0x1ae   : > { %1890 = vmatmul.mubr.msk.bf16.gmra.mrb[92].mxu1 %vm275_vm0, %v2169_v59 }
 0x1af   : > { %1460 = vmatprep.mubr.bf16.mxu1 %v2010_v2 }
 0x1b6   : > { %1891 = vmatmul.mubr.msk.bf16.gmra.mrb[96].mxu1 %vm275_vm0, %v1997_v60 }
 0x1b7   : > { %1470 = vmatprep.mubr.bf16.mxu1 %v2010_v2 }
 0x1be   : > { %1892 = vmatmul.mubr.msk.bf16.gmra.mrb[100].mxu1 %vm275_vm0, %v1999_v61 }
 0x1bf   : > { %1480 = vmatprep.mubr.bf16.mxu1 %v2010_v2 }
 0x1c6   : > { %1893 = vmatmul.mubr.msk.bf16.gmra.mrb[104].mxu1 %vm275_vm0, %v2001_v62 }
 0x1c9   : > { %v611_v63 = vpop.f32.mrb[0].mxu1  ;;  %v561_v0 = vpop.f32.mrb[24].mxu0 }
 0x1ca   : > { %v612_v1 = vadd.f32 0.5, %v611_v63  ;;  %v613_v3 = vpop.f32.mrb[1].mxu1  ;;  %v562_v4 = vadd.f32 0.5, %v561_v0  ;;  %v563_v5 = vpop.f32.mrb[25].mxu0 }
 0x1cb   : > { %v614_v6 = vadd.f32 0.5, %v613_v3  ;;  %v615_v7 = vpop.f32.mrb[2].mxu1  ;;  %v564_v8 = vadd.f32 0.5, %v563_v5  ;;  %v565_v9 = vpop.f32.mrb[26].mxu0 }
 0x1cc   : > { %v740_v10 = vmax.f32 %v612_v1, 0.0  ;;  %v616_v11 = vadd.f32 0.5, %v615_v7  ;;  %v617_v12 = vpop.f32.mrb[3].mxu1  ;;  %v720_v13 = vmax.f32 %v562_v4, 0.0  ;;  %v566_v2 = vadd.f32 0.5, %v565_v9  ;;  %v567_v14 = vpop.f32.mrb[27].mxu0 }
 0x1cd   : > { %v741_v15 = vmax.f32 %v614_v6, 0.0  ;;  %v618_v16 = vadd.f32 0.5, %v617_v12  ;;  %v721_v17 = vmax.f32 %v564_v8, 0.0  ;;  %v568_v18 = vadd.f32 0.5, %v567_v14 }
 0x1ce   : > { %v804_v19 = vmin.f32 %v740_v10, 1.0  ;;  %v742_v20 = vmax.f32 %v616_v11, 0.0  ;;  %v784_v21 = vmin.f32 %v720_v13, 1.0  ;;  %v722_v22 = vmax.f32 %v566_v2, 0.0 }
 0x1cf   : > { %v805_v23 = vmin.f32 %v741_v15, 1.0  ;;  %v743_v24 = vmax.f32 %v618_v16, 0.0  ;;  %v785_v25 = vmin.f32 %v721_v17, 1.0  ;;  %v723_v26 = vmax.f32 %v568_v18, 0.0 }
 0x1d0   : > { %868 = vst [vmem:[%s2272_s10 + $0xa0] sm:$0xff] %v804_v19  ;;  %v806_v27 = vmin.f32 %v742_v20, 1.0  ;;  %848 = vst [vmem:[%s2272_s10] sm:$0xff] %v784_v21  ;;  %v786_v28 = vmin.f32 %v722_v22, 1.0 }
 0x1d1   : > { %869 = vst [vmem:[%s2272_s10 + $0xa8] sm:$0xff] %v805_v23  ;;  %v807_v29 = vmin.f32 %v743_v24, 1.0  ;;  %v621_v30 = vpop.f32.mrb[4].mxu1  ;;  %849 = vst [vmem:[%s2272_s10 + $0x8] sm:$0xff] %v785_v25  ;;  %v787_v31 = vmin.f32 %v723_v26, 1.0  ;;  %v571_v32 = vpop.f32.mrb[28].mxu0 }
 0x1d2   : > { %870 = vst [vmem:[%s2272_s10 + $0xb0] sm:$0xff] %v806_v27  ;;  %v622_v33 = vadd.f32 0.5, %v621_v30  ;;  %v623_v34 = vpop.f32.mrb[5].mxu1  ;;  %850 = vst [vmem:[%s2272_s10 + $0x10] sm:$0xff] %v786_v28  ;;  %v572_v35 = vadd.f32 0.5, %v571_v32  ;;  %v573_v36 = vpop.f32.mrb[29].mxu0 }
 0x1d3   : > { %871 = vst [vmem:[%s2272_s10 + $0xb8] sm:$0xff] %v807_v29  ;;  %v624_v37 = vadd.f32 0.5, %v623_v34  ;;  %v625_v38 = vpop.f32.mrb[6].mxu1  ;;  %851 = vst [vmem:[%s2272_s10 + $0x18] sm:$0xff] %v787_v31  ;;  %v574_v39 = vadd.f32 0.5, %v573_v36  ;;  %v575_v40 = vpop.f32.mrb[30].mxu0 }
 0x1d4   : > { %v744_v41 = vmax.f32 %v622_v33, 0.0  ;;  %v626_v42 = vadd.f32 0.5, %v625_v38  ;;  %v627_v43 = vpop.f32.mrb[7].mxu1  ;;  %v724_v44 = vmax.f32 %v572_v35, 0.0  ;;  %v576_v45 = vadd.f32 0.5, %v575_v40  ;;  %v577_v46 = vpop.f32.mrb[31].mxu0 }
 0x1d5   : > { %v745_v47 = vmax.f32 %v624_v37, 0.0  ;;  %v628_v48 = vadd.f32 0.5, %v627_v43  ;;  %v725_v49 = vmax.f32 %v574_v39, 0.0  ;;  %v578_v50 = vadd.f32 0.5, %v577_v46 }
 0x1d6   : > { %v808_v51 = vmin.f32 %v744_v41, 1.0  ;;  %v746_v52 = vmax.f32 %v626_v42, 0.0  ;;  %v788_v53 = vmin.f32 %v724_v44, 1.0  ;;  %v726_v54 = vmax.f32 %v576_v45, 0.0 }
 0x1d7   : > { %v809_v55 = vmin.f32 %v745_v47, 1.0  ;;  %v747_v56 = vmax.f32 %v628_v48, 0.0  ;;  %v789_v57 = vmin.f32 %v725_v49, 1.0  ;;  %v727_v58 = vmax.f32 %v578_v50, 0.0 }
 0x1d8   : > { %872 = vst [vmem:[%s2272_s10 + $0xc0] sm:$0xff] %v808_v51  ;;  %v810_v59 = vmin.f32 %v746_v52, 1.0  ;;  %852 = vst [vmem:[%s2272_s10 + $0x20] sm:$0xff] %v788_v53  ;;  %v790_v60 = vmin.f32 %v726_v54, 1.0 }
 0x1d9   : > { %873 = vst [vmem:[%s2272_s10 + $0xc8] sm:$0xff] %v809_v55  ;;  %v811_v61 = vmin.f32 %v747_v56, 1.0  ;;  %v631_v62 = vpop.f32.mrb[8].mxu1  ;;  %853 = vst [vmem:[%s2272_s10 + $0x28] sm:$0xff] %v789_v57  ;;  %v791_v63 = vmin.f32 %v727_v58, 1.0  ;;  %v581_v0 = vpop.f32.mrb[32].mxu0 }
 0x1da   : > { %874 = vst [vmem:[%s2272_s10 + $0xd0] sm:$0xff] %v810_v59  ;;  %v632_v1 = vadd.f32 0.5, %v631_v62  ;;  %v633_v3 = vpop.f32.mrb[9].mxu1  ;;  %854 = vst [vmem:[%s2272_s10 + $0x30] sm:$0xff] %v790_v60  ;;  %v582_v4 = vadd.f32 0.5, %v581_v0  ;;  %v583_v5 = vpop.f32.mrb[33].mxu0 }
 0x1db   : > { %875 = vst [vmem:[%s2272_s10 + $0xd8] sm:$0xff] %v811_v61  ;;  %v634_v6 = vadd.f32 0.5, %v633_v3  ;;  %v635_v7 = vpop.f32.mrb[10].mxu1  ;;  %855 = vst [vmem:[%s2272_s10 + $0x38] sm:$0xff] %v791_v63  ;;  %v584_v8 = vadd.f32 0.5, %v583_v5  ;;  %v585_v9 = vpop.f32.mrb[34].mxu0 }
 0x1dc   : > { %v748_v10 = vmax.f32 %v632_v1, 0.0  ;;  %v636_v11 = vadd.f32 0.5, %v635_v7  ;;  %v637_v12 = vpop.f32.mrb[11].mxu1  ;;  %v728_v13 = vmax.f32 %v582_v4, 0.0  ;;  %v586_v2 = vadd.f32 0.5, %v585_v9  ;;  %v587_v14 = vpop.f32.mrb[35].mxu0 }
 0x1dd   : > { %v749_v15 = vmax.f32 %v634_v6, 0.0  ;;  %v638_v16 = vadd.f32 0.5, %v637_v12  ;;  %v729_v17 = vmax.f32 %v584_v8, 0.0  ;;  %v588_v18 = vadd.f32 0.5, %v587_v14 }
 0x1de   : > { %v812_v19 = vmin.f32 %v748_v10, 1.0  ;;  %v750_v20 = vmax.f32 %v636_v11, 0.0  ;;  %v792_v21 = vmin.f32 %v728_v13, 1.0  ;;  %v730_v22 = vmax.f32 %v586_v2, 0.0 }
 0x1df   : > { %v813_v23 = vmin.f32 %v749_v15, 1.0  ;;  %v751_v24 = vmax.f32 %v638_v16, 0.0  ;;  %v793_v25 = vmin.f32 %v729_v17, 1.0  ;;  %v731_v26 = vmax.f32 %v588_v18, 0.0 }
 0x1e0   : > { %876 = vst [vmem:[%s2272_s10 + $0xe0] sm:$0xff] %v812_v19  ;;  %v814_v27 = vmin.f32 %v750_v20, 1.0  ;;  %856 = vst [vmem:[%s2272_s10 + $0x40] sm:$0xff] %v792_v21  ;;  %v794_v28 = vmin.f32 %v730_v22, 1.0 }
 0x1e1   : > { %877 = vst [vmem:[%s2272_s10 + $0xe8] sm:$0xff] %v813_v23  ;;  %v815_v29 = vmin.f32 %v751_v24, 1.0  ;;  %v641_v30 = vpop.f32.mrb[12].mxu1  ;;  %857 = vst [vmem:[%s2272_s10 + $0x48] sm:$0xff] %v793_v25  ;;  %v795_v31 = vmin.f32 %v731_v26, 1.0  ;;  %v591_v32 = vpop.f32.mrb[36].mxu0 }
 0x1e2   : > { %878 = vst [vmem:[%s2272_s10 + $0xf0] sm:$0xff] %v814_v27  ;;  %v642_v33 = vadd.f32 0.5, %v641_v30  ;;  %v643_v34 = vpop.f32.mrb[13].mxu1  ;;  %858 = vst [vmem:[%s2272_s10 + $0x50] sm:$0xff] %v794_v28  ;;  %v592_v35 = vadd.f32 0.5, %v591_v32  ;;  %v593_v36 = vpop.f32.mrb[37].mxu0 }
 0x1e3   : > { %879 = vst [vmem:[%s2272_s10 + $0xf8] sm:$0xff] %v815_v29  ;;  %v644_v37 = vadd.f32 0.5, %v643_v34  ;;  %v645_v38 = vpop.f32.mrb[14].mxu1  ;;  %859 = vst [vmem:[%s2272_s10 + $0x58] sm:$0xff] %v795_v31  ;;  %v594_v39 = vadd.f32 0.5, %v593_v36  ;;  %v595_v40 = vpop.f32.mrb[38].mxu0 }
 0x1e4   : > { %v752_v41 = vmax.f32 %v642_v33, 0.0  ;;  %v646_v42 = vadd.f32 0.5, %v645_v38  ;;  %v647_v43 = vpop.f32.mrb[15].mxu1  ;;  %v732_v44 = vmax.f32 %v592_v35, 0.0  ;;  %v596_v45 = vadd.f32 0.5, %v595_v40  ;;  %v597_v46 = vpop.f32.mrb[39].mxu0 }
 0x1e5   : > { %v753_v47 = vmax.f32 %v644_v37, 0.0  ;;  %v648_v48 = vadd.f32 0.5, %v647_v43  ;;  %v733_v49 = vmax.f32 %v594_v39, 0.0  ;;  %v598_v50 = vadd.f32 0.5, %v597_v46 }
 0x1e6   : > { %v816_v51 = vmin.f32 %v752_v41, 1.0  ;;  %v754_v52 = vmax.f32 %v646_v42, 0.0  ;;  %v796_v53 = vmin.f32 %v732_v44, 1.0  ;;  %v734_v54 = vmax.f32 %v596_v45, 0.0 }
 0x1e7   : > { %v817_v55 = vmin.f32 %v753_v47, 1.0  ;;  %v755_v56 = vmax.f32 %v648_v48, 0.0  ;;  %v797_v57 = vmin.f32 %v733_v49, 1.0  ;;  %v735_v58 = vmax.f32 %v598_v50, 0.0 }
 0x1e8   : > { %880 = vst [vmem:[%s2272_s10 + $0x100] sm:$0xff] %v816_v51  ;;  %v818_v59 = vmin.f32 %v754_v52, 1.0  ;;  %860 = vst [vmem:[%s2272_s10 + $0x60] sm:$0xff] %v796_v53  ;;  %v798_v60 = vmin.f32 %v734_v54, 1.0 }
 0x1e9   : > { %881 = vst [vmem:[%s2272_s10 + $0x108] sm:$0xff] %v817_v55  ;;  %v819_v61 = vmin.f32 %v755_v56, 1.0  ;;  %v651_v62 = vpop.f32.mrb[16].mxu1  ;;  %861 = vst [vmem:[%s2272_s10 + $0x68] sm:$0xff] %v797_v57  ;;  %v799_v63 = vmin.f32 %v735_v58, 1.0  ;;  %v601_v0 = vpop.f32.mrb[40].mxu0 }
 0x1ea   : > { %882 = vst [vmem:[%s2272_s10 + $0x110] sm:$0xff] %v818_v59  ;;  %v652_v1 = vadd.f32 0.5, %v651_v62  ;;  %v653_v3 = vpop.f32.mrb[17].mxu1  ;;  %862 = vst [vmem:[%s2272_s10 + $0x70] sm:$0xff] %v798_v60  ;;  %v602_v4 = vadd.f32 0.5, %v601_v0  ;;  %v603_v5 = vpop.f32.mrb[41].mxu0 }
 0x1eb   : > { %883 = vst [vmem:[%s2272_s10 + $0x118] sm:$0xff] %v819_v61  ;;  %v654_v6 = vadd.f32 0.5, %v653_v3  ;;  %v655_v7 = vpop.f32.mrb[18].mxu1  ;;  %863 = vst [vmem:[%s2272_s10 + $0x78] sm:$0xff] %v799_v63  ;;  %v604_v8 = vadd.f32 0.5, %v603_v5  ;;  %v605_v9 = vpop.f32.mrb[42].mxu0 }
 0x1ec   : > { %v756_v10 = vmax.f32 %v652_v1, 0.0  ;;  %v656_v11 = vadd.f32 0.5, %v655_v7  ;;  %v657_v12 = vpop.f32.mrb[19].mxu1  ;;  %v736_v13 = vmax.f32 %v602_v4, 0.0  ;;  %v606_v2 = vadd.f32 0.5, %v605_v9  ;;  %v607_v14 = vpop.f32.mrb[43].mxu0 }
 0x1ed   : > { %v757_v15 = vmax.f32 %v654_v6, 0.0  ;;  %v658_v16 = vadd.f32 0.5, %v657_v12  ;;  %v737_v17 = vmax.f32 %v604_v8, 0.0  ;;  %v608_v18 = vadd.f32 0.5, %v607_v14 }
 0x1ee   : > { %v820_v19 = vmin.f32 %v756_v10, 1.0  ;;  %v758_v20 = vmax.f32 %v656_v11, 0.0  ;;  %v800_v21 = vmin.f32 %v736_v13, 1.0  ;;  %v738_v22 = vmax.f32 %v606_v2, 0.0 }
 0x1ef   : > { %v821_v23 = vmin.f32 %v757_v15, 1.0  ;;  %v759_v24 = vmax.f32 %v658_v16, 0.0  ;;  %v801_v25 = vmin.f32 %v737_v17, 1.0  ;;  %v739_v26 = vmax.f32 %v608_v18, 0.0 }
 0x1f0   : > { %884 = vst [vmem:[%s2272_s10 + $0x120] sm:$0xff] %v820_v19  ;;  %v822_v27 = vmin.f32 %v758_v20, 1.0  ;;  %864 = vst [vmem:[%s2272_s10 + $0x80] sm:$0xff] %v800_v21  ;;  %v802_v28 = vmin.f32 %v738_v22, 1.0 }
 0x1f1   : > { %885 = vst [vmem:[%s2272_s10 + $0x128] sm:$0xff] %v821_v23  ;;  %v823_v29 = vmin.f32 %v759_v24, 1.0  ;;  %v661_v30 = vpop.f32.mrb[20].mxu1  ;;  %865 = vst [vmem:[%s2272_s10 + $0x88] sm:$0xff] %v801_v25  ;;  %v803_v31 = vmin.f32 %v739_v26, 1.0  ;;  %v946_v32 = vpop.f32.mrb[44].mxu0 }
 0x1f2   : > { %886 = vst [vmem:[%s2272_s10 + $0x130] sm:$0xff] %v822_v27  ;;  %v662_v33 = vadd.f32 0.5, %v661_v30  ;;  %v663_v34 = vpop.f32.mrb[21].mxu1  ;;  %866 = vst [vmem:[%s2272_s10 + $0x90] sm:$0xff] %v802_v28  ;;  %v947_v35 = vadd.f32 0.5, %v946_v32  ;;  %v948_v36 = vpop.f32.mrb[45].mxu0 }
 0x1f3   : > { %887 = vst [vmem:[%s2272_s10 + $0x138] sm:$0xff] %v823_v29  ;;  %v664_v37 = vadd.f32 0.5, %v663_v34  ;;  %v665_v38 = vpop.f32.mrb[22].mxu1  ;;  %867 = vst [vmem:[%s2272_s10 + $0x98] sm:$0xff] %v803_v31  ;;  %v949_v39 = vadd.f32 0.5, %v948_v36  ;;  %v950_v40 = vpop.f32.mrb[46].mxu0 }
 0x1f4   : > { %v760_v41 = vmax.f32 %v662_v33, 0.0  ;;  %v666_v42 = vadd.f32 0.5, %v665_v38  ;;  %v667_v43 = vpop.f32.mrb[23].mxu1  ;;  %v1105_v44 = vmax.f32 %v947_v35, 0.0  ;;  %v951_v45 = vadd.f32 0.5, %v950_v40  ;;  %v952_v46 = vpop.f32.mrb[47].mxu0 }
 0x1f5   : > { %v761_v47 = vmax.f32 %v664_v37, 0.0  ;;  %v668_v48 = vadd.f32 0.5, %v667_v43  ;;  %v1106_v49 = vmax.f32 %v949_v39, 0.0  ;;  %v953_v50 = vadd.f32 0.5, %v952_v46 }
 0x1f6   : > { %v824_v51 = vmin.f32 %v760_v41, 1.0  ;;  %v762_v52 = vmax.f32 %v666_v42, 0.0  ;;  %v1169_v53 = vmin.f32 %v1105_v44, 1.0  ;;  %v1107_v54 = vmax.f32 %v951_v45, 0.0 }
 0x1f7   : > { %v825_v55 = vmin.f32 %v761_v47, 1.0  ;;  %v763_v56 = vmax.f32 %v668_v48, 0.0  ;;  %v1170_v57 = vmin.f32 %v1106_v49, 1.0  ;;  %v1108_v58 = vmax.f32 %v953_v50, 0.0 }
 0x1f8   : > { %888 = vst [vmem:[%s2272_s10 + $0x140] sm:$0xff] %v824_v51  ;;  %v826_v59 = vmin.f32 %v762_v52, 1.0  ;;  %1814 = vst [vmem:[%s2272_s10 + $0x200] sm:$0xff] %v1169_v53  ;;  %v1171_v60 = vmin.f32 %v1107_v54, 1.0 }
 0x1f9   : > { %889 = vst [vmem:[%s2272_s10 + $0x148] sm:$0xff] %v825_v55  ;;  %v827_v61 = vmin.f32 %v763_v56, 1.0  ;;  %v671_v62 = vpop.f32.mrb[24].mxu1  ;;  %1815 = vst [vmem:[%s2272_s10 + $0x208] sm:$0xff] %v1170_v57  ;;  %v1172_v63 = vmin.f32 %v1108_v58, 1.0  ;;  %v956_v0 = vpop.f32.mrb[48].mxu0 }
 0x1fa   : > { %890 = vst [vmem:[%s2272_s10 + $0x150] sm:$0xff] %v826_v59  ;;  %v672_v1 = vadd.f32 0.5, %v671_v62  ;;  %v673_v3 = vpop.f32.mrb[25].mxu1  ;;  %1816 = vst [vmem:[%s2272_s10 + $0x210] sm:$0xff] %v1171_v60  ;;  %v957_v4 = vadd.f32 0.5, %v956_v0  ;;  %v958_v5 = vpop.f32.mrb[49].mxu0 }
 0x1fb   : > { %891 = vst [vmem:[%s2272_s10 + $0x158] sm:$0xff] %v827_v61  ;;  %v674_v6 = vadd.f32 0.5, %v673_v3  ;;  %v675_v7 = vpop.f32.mrb[26].mxu1  ;;  %1817 = vst [vmem:[%s2272_s10 + $0x218] sm:$0xff] %v1172_v63  ;;  %v959_v8 = vadd.f32 0.5, %v958_v5  ;;  %v960_v9 = vpop.f32.mrb[50].mxu0 }
 0x1fc   : > { %v764_v10 = vmax.f32 %v672_v1, 0.0  ;;  %v676_v11 = vadd.f32 0.5, %v675_v7  ;;  %v677_v12 = vpop.f32.mrb[27].mxu1  ;;  %v1109_v13 = vmax.f32 %v957_v4, 0.0  ;;  %v961_v2 = vadd.f32 0.5, %v960_v9  ;;  %v962_v14 = vpop.f32.mrb[51].mxu0 }
 0x1fd   : > { %v765_v15 = vmax.f32 %v674_v6, 0.0  ;;  %v678_v16 = vadd.f32 0.5, %v677_v12  ;;  %v1110_v17 = vmax.f32 %v959_v8, 0.0  ;;  %v963_v18 = vadd.f32 0.5, %v962_v14 }
 0x1fe   : > { %v828_v19 = vmin.f32 %v764_v10, 1.0  ;;  %v766_v20 = vmax.f32 %v676_v11, 0.0  ;;  %v1173_v21 = vmin.f32 %v1109_v13, 1.0  ;;  %v1111_v22 = vmax.f32 %v961_v2, 0.0 }
 0x1ff   : > { %v829_v23 = vmin.f32 %v765_v15, 1.0  ;;  %v767_v24 = vmax.f32 %v678_v16, 0.0  ;;  %v1174_v25 = vmin.f32 %v1110_v17, 1.0  ;;  %v1112_v26 = vmax.f32 %v963_v18, 0.0 }
 0x200   : > { %892 = vst [vmem:[%s2272_s10 + $0x160] sm:$0xff] %v828_v19  ;;  %v830_v27 = vmin.f32 %v766_v20, 1.0  ;;  %1818 = vst [vmem:[%s2272_s10 + $0x220] sm:$0xff] %v1173_v21  ;;  %v1175_v28 = vmin.f32 %v1111_v22, 1.0 }
 0x201   : > { %893 = vst [vmem:[%s2272_s10 + $0x168] sm:$0xff] %v829_v23  ;;  %v831_v29 = vmin.f32 %v767_v24, 1.0  ;;  %v681_v30 = vpop.f32.mrb[28].mxu1  ;;  %1819 = vst [vmem:[%s2272_s10 + $0x228] sm:$0xff] %v1174_v25  ;;  %v1176_v31 = vmin.f32 %v1112_v26, 1.0  ;;  %v966_v32 = vpop.f32.mrb[52].mxu0 }
 0x202   : > { %894 = vst [vmem:[%s2272_s10 + $0x170] sm:$0xff] %v830_v27  ;;  %v682_v33 = vadd.f32 0.5, %v681_v30  ;;  %v683_v34 = vpop.f32.mrb[29].mxu1  ;;  %1820 = vst [vmem:[%s2272_s10 + $0x230] sm:$0xff] %v1175_v28  ;;  %v967_v35 = vadd.f32 0.5, %v966_v32  ;;  %v968_v36 = vpop.f32.mrb[53].mxu0 }
 0x203   : > { %895 = vst [vmem:[%s2272_s10 + $0x178] sm:$0xff] %v831_v29  ;;  %v684_v37 = vadd.f32 0.5, %v683_v34  ;;  %v685_v38 = vpop.f32.mrb[30].mxu1  ;;  %1821 = vst [vmem:[%s2272_s10 + $0x238] sm:$0xff] %v1176_v31  ;;  %v969_v39 = vadd.f32 0.5, %v968_v36  ;;  %v970_v40 = vpop.f32.mrb[54].mxu0 }
 0x204   : > { %v768_v41 = vmax.f32 %v682_v33, 0.0  ;;  %v686_v42 = vadd.f32 0.5, %v685_v38  ;;  %v687_v43 = vpop.f32.mrb[31].mxu1  ;;  %v1113_v44 = vmax.f32 %v967_v35, 0.0  ;;  %v971_v45 = vadd.f32 0.5, %v970_v40  ;;  %v972_v46 = vpop.f32.mrb[55].mxu0 }
 0x205   : > { %v769_v47 = vmax.f32 %v684_v37, 0.0  ;;  %v688_v48 = vadd.f32 0.5, %v687_v43  ;;  %v1114_v49 = vmax.f32 %v969_v39, 0.0  ;;  %v973_v50 = vadd.f32 0.5, %v972_v46 }
 0x206   : > { %v832_v51 = vmin.f32 %v768_v41, 1.0  ;;  %v770_v52 = vmax.f32 %v686_v42, 0.0  ;;  %v1177_v53 = vmin.f32 %v1113_v44, 1.0  ;;  %v1115_v54 = vmax.f32 %v971_v45, 0.0 }
 0x207   : > { %v833_v55 = vmin.f32 %v769_v47, 1.0  ;;  %v771_v56 = vmax.f32 %v688_v48, 0.0  ;;  %v1178_v57 = vmin.f32 %v1114_v49, 1.0  ;;  %v1116_v58 = vmax.f32 %v973_v50, 0.0 }
 0x208   : > { %896 = vst [vmem:[%s2272_s10 + $0x180] sm:$0xff] %v832_v51  ;;  %v834_v59 = vmin.f32 %v770_v52, 1.0  ;;  %1822 = vst [vmem:[%s2272_s10 + $0x240] sm:$0xff] %v1177_v53  ;;  %v1179_v60 = vmin.f32 %v1115_v54, 1.0 }
 0x209   : > { %897 = vst [vmem:[%s2272_s10 + $0x188] sm:$0xff] %v833_v55  ;;  %v835_v61 = vmin.f32 %v771_v56, 1.0  ;;  %v691_v62 = vpop.f32.mrb[32].mxu1  ;;  %1823 = vst [vmem:[%s2272_s10 + $0x248] sm:$0xff] %v1178_v57  ;;  %v1180_v63 = vmin.f32 %v1116_v58, 1.0  ;;  %v976_v0 = vpop.f32.mrb[56].mxu0 }
 0x20a   : > { %898 = vst [vmem:[%s2272_s10 + $0x190] sm:$0xff] %v834_v59  ;;  %v692_v1 = vadd.f32 0.5, %v691_v62  ;;  %v693_v3 = vpop.f32.mrb[33].mxu1  ;;  %1824 = vst [vmem:[%s2272_s10 + $0x250] sm:$0xff] %v1179_v60  ;;  %v977_v4 = vadd.f32 0.5, %v976_v0  ;;  %v978_v5 = vpop.f32.mrb[57].mxu0 }
 0x20b   : > { %899 = vst [vmem:[%s2272_s10 + $0x198] sm:$0xff] %v835_v61  ;;  %v694_v6 = vadd.f32 0.5, %v693_v3  ;;  %v695_v7 = vpop.f32.mrb[34].mxu1  ;;  %1825 = vst [vmem:[%s2272_s10 + $0x258] sm:$0xff] %v1180_v63  ;;  %v979_v8 = vadd.f32 0.5, %v978_v5  ;;  %v980_v9 = vpop.f32.mrb[58].mxu0 }
 0x20c   : > { %v772_v10 = vmax.f32 %v692_v1, 0.0  ;;  %v696_v11 = vadd.f32 0.5, %v695_v7  ;;  %v697_v12 = vpop.f32.mrb[35].mxu1  ;;  %v1117_v13 = vmax.f32 %v977_v4, 0.0  ;;  %v981_v2 = vadd.f32 0.5, %v980_v9  ;;  %v982_v14 = vpop.f32.mrb[59].mxu0 }
 0x20d   : > { %v773_v15 = vmax.f32 %v694_v6, 0.0  ;;  %v698_v16 = vadd.f32 0.5, %v697_v12  ;;  %v1118_v17 = vmax.f32 %v979_v8, 0.0  ;;  %v983_v18 = vadd.f32 0.5, %v982_v14 }
 0x20e   : > { %v836_v19 = vmin.f32 %v772_v10, 1.0  ;;  %v774_v20 = vmax.f32 %v696_v11, 0.0  ;;  %v1181_v21 = vmin.f32 %v1117_v13, 1.0  ;;  %v1119_v22 = vmax.f32 %v981_v2, 0.0 }
 0x20f   : > { %v837_v23 = vmin.f32 %v773_v15, 1.0  ;;  %v775_v24 = vmax.f32 %v698_v16, 0.0  ;;  %v1182_v25 = vmin.f32 %v1118_v17, 1.0  ;;  %v1120_v26 = vmax.f32 %v983_v18, 0.0 }
 0x210   : > { %900 = vst [vmem:[%s2272_s10 + $0x1a0] sm:$0xff] %v836_v19  ;;  %v838_v27 = vmin.f32 %v774_v20, 1.0  ;;  %1826 = vst [vmem:[%s2272_s10 + $0x260] sm:$0xff] %v1181_v21  ;;  %v1183_v28 = vmin.f32 %v1119_v22, 1.0 }
 0x211   : > { %901 = vst [vmem:[%s2272_s10 + $0x1a8] sm:$0xff] %v837_v23  ;;  %v839_v29 = vmin.f32 %v775_v24, 1.0  ;;  %v701_v30 = vpop.f32.mrb[36].mxu1  ;;  %1827 = vst [vmem:[%s2272_s10 + $0x268] sm:$0xff] %v1182_v25  ;;  %v1184_v31 = vmin.f32 %v1120_v26, 1.0  ;;  %v986_v32 = vpop.f32.mrb[60].mxu0 }
 0x212   : > { %902 = vst [vmem:[%s2272_s10 + $0x1b0] sm:$0xff] %v838_v27  ;;  %v702_v33 = vadd.f32 0.5, %v701_v30  ;;  %v703_v34 = vpop.f32.mrb[37].mxu1  ;;  %1828 = vst [vmem:[%s2272_s10 + $0x270] sm:$0xff] %v1183_v28  ;;  %v987_v35 = vadd.f32 0.5, %v986_v32  ;;  %v988_v36 = vpop.f32.mrb[61].mxu0 }
 0x213   : > { %903 = vst [vmem:[%s2272_s10 + $0x1b8] sm:$0xff] %v839_v29  ;;  %v704_v37 = vadd.f32 0.5, %v703_v34  ;;  %v705_v38 = vpop.f32.mrb[38].mxu1  ;;  %1829 = vst [vmem:[%s2272_s10 + $0x278] sm:$0xff] %v1184_v31  ;;  %v989_v39 = vadd.f32 0.5, %v988_v36  ;;  %v990_v40 = vpop.f32.mrb[62].mxu0 }
 0x214   : > { %v776_v41 = vmax.f32 %v702_v33, 0.0  ;;  %v706_v42 = vadd.f32 0.5, %v705_v38  ;;  %v707_v43 = vpop.f32.mrb[39].mxu1  ;;  %v1121_v44 = vmax.f32 %v987_v35, 0.0  ;;  %v991_v45 = vadd.f32 0.5, %v990_v40  ;;  %v992_v46 = vpop.f32.mrb[63].mxu0 }
 0x215   : > { %v777_v47 = vmax.f32 %v704_v37, 0.0  ;;  %v708_v48 = vadd.f32 0.5, %v707_v43  ;;  %v1122_v49 = vmax.f32 %v989_v39, 0.0  ;;  %v993_v50 = vadd.f32 0.5, %v992_v46 }
 0x216   : > { %v840_v51 = vmin.f32 %v776_v41, 1.0  ;;  %v778_v52 = vmax.f32 %v706_v42, 0.0  ;;  %v1185_v53 = vmin.f32 %v1121_v44, 1.0  ;;  %v1123_v54 = vmax.f32 %v991_v45, 0.0 }
 0x217   : > { %v841_v55 = vmin.f32 %v777_v47, 1.0  ;;  %v779_v56 = vmax.f32 %v708_v48, 0.0  ;;  %v1186_v57 = vmin.f32 %v1122_v49, 1.0  ;;  %v1124_v58 = vmax.f32 %v993_v50, 0.0 }
 0x218   : > { %904 = vst [vmem:[%s2272_s10 + $0x1c0] sm:$0xff] %v840_v51  ;;  %v842_v59 = vmin.f32 %v778_v52, 1.0  ;;  %1830 = vst [vmem:[%s2272_s10 + $0x280] sm:$0xff] %v1185_v53  ;;  %v1187_v60 = vmin.f32 %v1123_v54, 1.0 }
 0x219   : > { %905 = vst [vmem:[%s2272_s10 + $0x1c8] sm:$0xff] %v841_v55  ;;  %v843_v61 = vmin.f32 %v779_v56, 1.0  ;;  %v711_v62 = vpop.f32.mrb[40].mxu1  ;;  %1831 = vst [vmem:[%s2272_s10 + $0x288] sm:$0xff] %v1186_v57  ;;  %v1188_v63 = vmin.f32 %v1124_v58, 1.0  ;;  %v996_v0 = vpop.f32.mrb[64].mxu0 }
 0x21a   : > { %906 = vst [vmem:[%s2272_s10 + $0x1d0] sm:$0xff] %v842_v59  ;;  %v712_v1 = vadd.f32 0.5, %v711_v62  ;;  %v713_v3 = vpop.f32.mrb[41].mxu1  ;;  %1832 = vst [vmem:[%s2272_s10 + $0x290] sm:$0xff] %v1187_v60  ;;  %v997_v4 = vadd.f32 0.5, %v996_v0  ;;  %v998_v5 = vpop.f32.mrb[65].mxu0 }
 0x21b   : > { %907 = vst [vmem:[%s2272_s10 + $0x1d8] sm:$0xff] %v843_v61  ;;  %v714_v6 = vadd.f32 0.5, %v713_v3  ;;  %v715_v7 = vpop.f32.mrb[42].mxu1  ;;  %1833 = vst [vmem:[%s2272_s10 + $0x298] sm:$0xff] %v1188_v63  ;;  %v999_v8 = vadd.f32 0.5, %v998_v5  ;;  %v1000_v9 = vpop.f32.mrb[66].mxu0 }
 0x21c   : > { %v780_v10 = vmax.f32 %v712_v1, 0.0  ;;  %v716_v11 = vadd.f32 0.5, %v715_v7  ;;  %v717_v12 = vpop.f32.mrb[43].mxu1  ;;  %v1125_v13 = vmax.f32 %v997_v4, 0.0  ;;  %v1001_v2 = vadd.f32 0.5, %v1000_v9  ;;  %v1002_v14 = vpop.f32.mrb[67].mxu0 }
 0x21d   : > { %v781_v15 = vmax.f32 %v714_v6, 0.0  ;;  %v718_v16 = vadd.f32 0.5, %v717_v12  ;;  %v1126_v17 = vmax.f32 %v999_v8, 0.0  ;;  %v1003_v18 = vadd.f32 0.5, %v1002_v14 }
 0x21e   : > { %v844_v19 = vmin.f32 %v780_v10, 1.0  ;;  %v782_v20 = vmax.f32 %v716_v11, 0.0  ;;  %v1189_v21 = vmin.f32 %v1125_v13, 1.0  ;;  %v1127_v22 = vmax.f32 %v1001_v2, 0.0 }
 0x21f   : > { %v845_v23 = vmin.f32 %v781_v15, 1.0  ;;  %v783_v24 = vmax.f32 %v718_v16, 0.0  ;;  %v1190_v25 = vmin.f32 %v1126_v17, 1.0  ;;  %v1128_v26 = vmax.f32 %v1003_v18, 0.0 }
 0x220   : > { %908 = vst [vmem:[%s2272_s10 + $0x1e0] sm:$0xff] %v844_v19  ;;  %v846_v27 = vmin.f32 %v782_v20, 1.0  ;;  %1834 = vst [vmem:[%s2272_s10 + $0x2a0] sm:$0xff] %v1189_v21  ;;  %v1191_v28 = vmin.f32 %v1127_v22, 1.0 }
 0x221   : > { %909 = vst [vmem:[%s2272_s10 + $0x1e8] sm:$0xff] %v845_v23  ;;  %v847_v29 = vmin.f32 %v783_v24, 1.0  ;;  %v1332_v30 = vpop.f32.mrb[44].mxu1  ;;  %1835 = vst [vmem:[%s2272_s10 + $0x2a8] sm:$0xff] %v1190_v25  ;;  %v1192_v31 = vmin.f32 %v1128_v26, 1.0  ;;  %v1006_v32 = vpop.f32.mrb[68].mxu0 }
 0x222   : > { %910 = vst [vmem:[%s2272_s10 + $0x1f0] sm:$0xff] %v846_v27  ;;  %v1333_v33 = vadd.f32 0.5, %v1332_v30  ;;  %v1334_v34 = vpop.f32.mrb[45].mxu1  ;;  %1836 = vst [vmem:[%s2272_s10 + $0x2b0] sm:$0xff] %v1191_v28  ;;  %v1007_v35 = vadd.f32 0.5, %v1006_v32  ;;  %v1008_v36 = vpop.f32.mrb[69].mxu0 }
 0x223   : > { %911 = vst [vmem:[%s2272_s10 + $0x1f8] sm:$0xff] %v847_v29  ;;  %v1335_v37 = vadd.f32 0.5, %v1334_v34  ;;  %v1336_v38 = vpop.f32.mrb[46].mxu1  ;;  %1837 = vst [vmem:[%s2272_s10 + $0x2b8] sm:$0xff] %v1192_v31  ;;  %v1009_v39 = vadd.f32 0.5, %v1008_v36  ;;  %v1010_v40 = vpop.f32.mrb[70].mxu0 }
 0x224   : > { %v1491_v41 = vmax.f32 %v1333_v33, 0.0  ;;  %v1337_v42 = vadd.f32 0.5, %v1336_v38  ;;  %v1338_v43 = vpop.f32.mrb[47].mxu1  ;;  %v1129_v44 = vmax.f32 %v1007_v35, 0.0  ;;  %v1011_v45 = vadd.f32 0.5, %v1010_v40  ;;  %v1012_v46 = vpop.f32.mrb[71].mxu0 }
 0x225   : > { %v1492_v47 = vmax.f32 %v1335_v37, 0.0  ;;  %v1339_v48 = vadd.f32 0.5, %v1338_v43  ;;  %v1130_v49 = vmax.f32 %v1009_v39, 0.0  ;;  %v1013_v50 = vadd.f32 0.5, %v1012_v46 }
 0x226   : > { %v1555_v51 = vmin.f32 %v1491_v41, 1.0  ;;  %v1493_v52 = vmax.f32 %v1337_v42, 0.0  ;;  %v1193_v53 = vmin.f32 %v1129_v44, 1.0  ;;  %v1131_v54 = vmax.f32 %v1011_v45, 0.0 }
 0x227   : > { %v1556_v55 = vmin.f32 %v1492_v47, 1.0  ;;  %v1494_v56 = vmax.f32 %v1339_v48, 0.0  ;;  %v1194_v57 = vmin.f32 %v1130_v49, 1.0  ;;  %v1132_v58 = vmax.f32 %v1013_v50, 0.0 }
 0x228   : > { %1894 = vst [vmem:[%s2272_s10 + $0x400] sm:$0xff] %v1555_v51  ;;  %v1557_v59 = vmin.f32 %v1493_v52, 1.0  ;;  %1838 = vst [vmem:[%s2272_s10 + $0x2c0] sm:$0xff] %v1193_v53  ;;  %v1195_v60 = vmin.f32 %v1131_v54, 1.0 }
 0x229   : > { %1895 = vst [vmem:[%s2272_s10 + $0x408] sm:$0xff] %v1556_v55  ;;  %v1558_v61 = vmin.f32 %v1494_v56, 1.0  ;;  %v1342_v62 = vpop.f32.mrb[48].mxu1  ;;  %1839 = vst [vmem:[%s2272_s10 + $0x2c8] sm:$0xff] %v1194_v57  ;;  %v1196_v63 = vmin.f32 %v1132_v58, 1.0  ;;  %v1016_v0 = vpop.f32.mrb[72].mxu0 }
 0x22a   : > { %1896 = vst [vmem:[%s2272_s10 + $0x410] sm:$0xff] %v1557_v59  ;;  %v1343_v1 = vadd.f32 0.5, %v1342_v62  ;;  %v1344_v3 = vpop.f32.mrb[49].mxu1  ;;  %1840 = vst [vmem:[%s2272_s10 + $0x2d0] sm:$0xff] %v1195_v60  ;;  %v1017_v4 = vadd.f32 0.5, %v1016_v0  ;;  %v1018_v5 = vpop.f32.mrb[73].mxu0 }
 0x22b   : > { %1897 = vst [vmem:[%s2272_s10 + $0x418] sm:$0xff] %v1558_v61  ;;  %v1345_v6 = vadd.f32 0.5, %v1344_v3  ;;  %v1346_v7 = vpop.f32.mrb[50].mxu1  ;;  %1841 = vst [vmem:[%s2272_s10 + $0x2d8] sm:$0xff] %v1196_v63  ;;  %v1019_v8 = vadd.f32 0.5, %v1018_v5  ;;  %v1020_v9 = vpop.f32.mrb[74].mxu0 }
 0x22c   : > { %v1495_v10 = vmax.f32 %v1343_v1, 0.0  ;;  %v1347_v11 = vadd.f32 0.5, %v1346_v7  ;;  %v1348_v12 = vpop.f32.mrb[51].mxu1  ;;  %v1133_v13 = vmax.f32 %v1017_v4, 0.0  ;;  %v1021_v2 = vadd.f32 0.5, %v1020_v9  ;;  %v1022_v14 = vpop.f32.mrb[75].mxu0 }
 0x22d   : > { %v1496_v15 = vmax.f32 %v1345_v6, 0.0  ;;  %v1349_v16 = vadd.f32 0.5, %v1348_v12  ;;  %v1134_v17 = vmax.f32 %v1019_v8, 0.0  ;;  %v1023_v18 = vadd.f32 0.5, %v1022_v14 }
 0x22e   : > { %v1559_v19 = vmin.f32 %v1495_v10, 1.0  ;;  %v1497_v20 = vmax.f32 %v1347_v11, 0.0  ;;  %v1197_v21 = vmin.f32 %v1133_v13, 1.0  ;;  %v1135_v22 = vmax.f32 %v1021_v2, 0.0 }
 0x22f   : > { %v1560_v23 = vmin.f32 %v1496_v15, 1.0  ;;  %v1498_v24 = vmax.f32 %v1349_v16, 0.0  ;;  %v1198_v25 = vmin.f32 %v1134_v17, 1.0  ;;  %v1136_v26 = vmax.f32 %v1023_v18, 0.0 }
 0x230   : > { %1898 = vst [vmem:[%s2272_s10 + $0x420] sm:$0xff] %v1559_v19  ;;  %v1561_v27 = vmin.f32 %v1497_v20, 1.0  ;;  %1842 = vst [vmem:[%s2272_s10 + $0x2e0] sm:$0xff] %v1197_v21  ;;  %v1199_v28 = vmin.f32 %v1135_v22, 1.0 }
 0x231   : > { %1899 = vst [vmem:[%s2272_s10 + $0x428] sm:$0xff] %v1560_v23  ;;  %v1562_v29 = vmin.f32 %v1498_v24, 1.0  ;;  %v1352_v30 = vpop.f32.mrb[52].mxu1  ;;  %1843 = vst [vmem:[%s2272_s10 + $0x2e8] sm:$0xff] %v1198_v25  ;;  %v1200_v31 = vmin.f32 %v1136_v26, 1.0  ;;  %v1026_v32 = vpop.f32.mrb[76].mxu0 }
 0x232   : > { %1900 = vst [vmem:[%s2272_s10 + $0x430] sm:$0xff] %v1561_v27  ;;  %v1353_v33 = vadd.f32 0.5, %v1352_v30  ;;  %v1354_v34 = vpop.f32.mrb[53].mxu1  ;;  %1844 = vst [vmem:[%s2272_s10 + $0x2f0] sm:$0xff] %v1199_v28  ;;  %v1027_v35 = vadd.f32 0.5, %v1026_v32  ;;  %v1028_v36 = vpop.f32.mrb[77].mxu0 }
 0x233   : > { %1901 = vst [vmem:[%s2272_s10 + $0x438] sm:$0xff] %v1562_v29  ;;  %v1355_v37 = vadd.f32 0.5, %v1354_v34  ;;  %v1356_v38 = vpop.f32.mrb[54].mxu1  ;;  %1845 = vst [vmem:[%s2272_s10 + $0x2f8] sm:$0xff] %v1200_v31  ;;  %v1029_v39 = vadd.f32 0.5, %v1028_v36  ;;  %v1030_v40 = vpop.f32.mrb[78].mxu0 }
 0x234   : > { %v1499_v41 = vmax.f32 %v1353_v33, 0.0  ;;  %v1357_v42 = vadd.f32 0.5, %v1356_v38  ;;  %v1358_v43 = vpop.f32.mrb[55].mxu1  ;;  %v1137_v44 = vmax.f32 %v1027_v35, 0.0  ;;  %v1031_v45 = vadd.f32 0.5, %v1030_v40  ;;  %v1032_v46 = vpop.f32.mrb[79].mxu0 }
 0x235   : > { %v1500_v47 = vmax.f32 %v1355_v37, 0.0  ;;  %v1359_v48 = vadd.f32 0.5, %v1358_v43  ;;  %v1138_v49 = vmax.f32 %v1029_v39, 0.0  ;;  %v1033_v50 = vadd.f32 0.5, %v1032_v46 }
 0x236   : > { %v1563_v51 = vmin.f32 %v1499_v41, 1.0  ;;  %v1501_v52 = vmax.f32 %v1357_v42, 0.0  ;;  %v1201_v53 = vmin.f32 %v1137_v44, 1.0  ;;  %v1139_v54 = vmax.f32 %v1031_v45, 0.0 }
 0x237   : > { %v1564_v55 = vmin.f32 %v1500_v47, 1.0  ;;  %v1502_v56 = vmax.f32 %v1359_v48, 0.0  ;;  %v1202_v57 = vmin.f32 %v1138_v49, 1.0  ;;  %v1140_v58 = vmax.f32 %v1033_v50, 0.0 }
 0x238   : > { %1902 = vst [vmem:[%s2272_s10 + $0x440] sm:$0xff] %v1563_v51  ;;  %v1565_v59 = vmin.f32 %v1501_v52, 1.0  ;;  %1846 = vst [vmem:[%s2272_s10 + $0x300] sm:$0xff] %v1201_v53  ;;  %v1203_v60 = vmin.f32 %v1139_v54, 1.0 }
 0x239   : > { %1903 = vst [vmem:[%s2272_s10 + $0x448] sm:$0xff] %v1564_v55  ;;  %v1566_v61 = vmin.f32 %v1502_v56, 1.0  ;;  %v1362_v62 = vpop.f32.mrb[56].mxu1  ;;  %1847 = vst [vmem:[%s2272_s10 + $0x308] sm:$0xff] %v1202_v57  ;;  %v1204_v63 = vmin.f32 %v1140_v58, 1.0  ;;  %v1036_v0 = vpop.f32.mrb[80].mxu0 }
 0x23a   : > { %1904 = vst [vmem:[%s2272_s10 + $0x450] sm:$0xff] %v1565_v59  ;;  %v1363_v1 = vadd.f32 0.5, %v1362_v62  ;;  %v1364_v3 = vpop.f32.mrb[57].mxu1  ;;  %1848 = vst [vmem:[%s2272_s10 + $0x310] sm:$0xff] %v1203_v60  ;;  %v1037_v4 = vadd.f32 0.5, %v1036_v0  ;;  %v1038_v5 = vpop.f32.mrb[81].mxu0 }
 0x23b   : > { %1905 = vst [vmem:[%s2272_s10 + $0x458] sm:$0xff] %v1566_v61  ;;  %v1365_v6 = vadd.f32 0.5, %v1364_v3  ;;  %v1366_v7 = vpop.f32.mrb[58].mxu1  ;;  %1849 = vst [vmem:[%s2272_s10 + $0x318] sm:$0xff] %v1204_v63  ;;  %v1039_v8 = vadd.f32 0.5, %v1038_v5  ;;  %v1040_v9 = vpop.f32.mrb[82].mxu0 }
 0x23c   : > { %v1503_v10 = vmax.f32 %v1363_v1, 0.0  ;;  %v1367_v11 = vadd.f32 0.5, %v1366_v7  ;;  %v1368_v12 = vpop.f32.mrb[59].mxu1  ;;  %v1141_v13 = vmax.f32 %v1037_v4, 0.0  ;;  %v1041_v2 = vadd.f32 0.5, %v1040_v9  ;;  %v1042_v14 = vpop.f32.mrb[83].mxu0 }
 0x23d   : > { %v1504_v15 = vmax.f32 %v1365_v6, 0.0  ;;  %v1369_v16 = vadd.f32 0.5, %v1368_v12  ;;  %v1142_v17 = vmax.f32 %v1039_v8, 0.0  ;;  %v1043_v18 = vadd.f32 0.5, %v1042_v14 }
 0x23e   : > { %v1567_v19 = vmin.f32 %v1503_v10, 1.0  ;;  %v1505_v20 = vmax.f32 %v1367_v11, 0.0  ;;  %v1205_v21 = vmin.f32 %v1141_v13, 1.0  ;;  %v1143_v22 = vmax.f32 %v1041_v2, 0.0 }
 0x23f   : > { %v1568_v23 = vmin.f32 %v1504_v15, 1.0  ;;  %v1506_v24 = vmax.f32 %v1369_v16, 0.0  ;;  %v1206_v25 = vmin.f32 %v1142_v17, 1.0  ;;  %v1144_v26 = vmax.f32 %v1043_v18, 0.0 }
 0x240   : > { %1906 = vst [vmem:[%s2272_s10 + $0x460] sm:$0xff] %v1567_v19  ;;  %v1569_v27 = vmin.f32 %v1505_v20, 1.0  ;;  %1850 = vst [vmem:[%s2272_s10 + $0x320] sm:$0xff] %v1205_v21  ;;  %v1207_v28 = vmin.f32 %v1143_v22, 1.0 }
 0x241   : > { %1907 = vst [vmem:[%s2272_s10 + $0x468] sm:$0xff] %v1568_v23  ;;  %v1570_v29 = vmin.f32 %v1506_v24, 1.0  ;;  %v1372_v30 = vpop.f32.mrb[60].mxu1  ;;  %1851 = vst [vmem:[%s2272_s10 + $0x328] sm:$0xff] %v1206_v25  ;;  %v1208_v31 = vmin.f32 %v1144_v26, 1.0  ;;  %v1046_v32 = vpop.f32.mrb[84].mxu0 }
 0x242   : > { %1908 = vst [vmem:[%s2272_s10 + $0x470] sm:$0xff] %v1569_v27  ;;  %v1373_v33 = vadd.f32 0.5, %v1372_v30  ;;  %v1374_v34 = vpop.f32.mrb[61].mxu1  ;;  %1852 = vst [vmem:[%s2272_s10 + $0x330] sm:$0xff] %v1207_v28  ;;  %v1047_v35 = vadd.f32 0.5, %v1046_v32  ;;  %v1048_v36 = vpop.f32.mrb[85].mxu0 }
 0x243   : > { %1909 = vst [vmem:[%s2272_s10 + $0x478] sm:$0xff] %v1570_v29  ;;  %v1375_v37 = vadd.f32 0.5, %v1374_v34  ;;  %v1376_v38 = vpop.f32.mrb[62].mxu1  ;;  %1853 = vst [vmem:[%s2272_s10 + $0x338] sm:$0xff] %v1208_v31  ;;  %v1049_v39 = vadd.f32 0.5, %v1048_v36  ;;  %v1050_v40 = vpop.f32.mrb[86].mxu0 }
 0x244   : > { %v1507_v41 = vmax.f32 %v1373_v33, 0.0  ;;  %v1377_v42 = vadd.f32 0.5, %v1376_v38  ;;  %v1378_v43 = vpop.f32.mrb[63].mxu1  ;;  %v1145_v44 = vmax.f32 %v1047_v35, 0.0  ;;  %v1051_v45 = vadd.f32 0.5, %v1050_v40  ;;  %v1052_v46 = vpop.f32.mrb[87].mxu0 }
 0x245   : > { %v1508_v47 = vmax.f32 %v1375_v37, 0.0  ;;  %v1379_v48 = vadd.f32 0.5, %v1378_v43  ;;  %v1146_v49 = vmax.f32 %v1049_v39, 0.0  ;;  %v1053_v50 = vadd.f32 0.5, %v1052_v46 }
 0x246   : > { %v1571_v51 = vmin.f32 %v1507_v41, 1.0  ;;  %v1509_v52 = vmax.f32 %v1377_v42, 0.0  ;;  %v1209_v53 = vmin.f32 %v1145_v44, 1.0  ;;  %v1147_v54 = vmax.f32 %v1051_v45, 0.0 }
 0x247   : > { %v1572_v55 = vmin.f32 %v1508_v47, 1.0  ;;  %v1510_v56 = vmax.f32 %v1379_v48, 0.0  ;;  %v1210_v57 = vmin.f32 %v1146_v49, 1.0  ;;  %v1148_v58 = vmax.f32 %v1053_v50, 0.0 }
 0x248   : > { %1910 = vst [vmem:[%s2272_s10 + $0x480] sm:$0xff] %v1571_v51  ;;  %v1573_v59 = vmin.f32 %v1509_v52, 1.0  ;;  %1854 = vst [vmem:[%s2272_s10 + $0x340] sm:$0xff] %v1209_v53  ;;  %v1211_v60 = vmin.f32 %v1147_v54, 1.0 }
 0x249   : > { %1911 = vst [vmem:[%s2272_s10 + $0x488] sm:$0xff] %v1572_v55  ;;  %v1574_v61 = vmin.f32 %v1510_v56, 1.0  ;;  %v1382_v62 = vpop.f32.mrb[64].mxu1  ;;  %1855 = vst [vmem:[%s2272_s10 + $0x348] sm:$0xff] %v1210_v57  ;;  %v1212_v63 = vmin.f32 %v1148_v58, 1.0  ;;  %v1056_v0 = vpop.f32.mrb[88].mxu0 }
 0x24a   : > { %1912 = vst [vmem:[%s2272_s10 + $0x490] sm:$0xff] %v1573_v59  ;;  %v1383_v1 = vadd.f32 0.5, %v1382_v62  ;;  %v1384_v3 = vpop.f32.mrb[65].mxu1  ;;  %1856 = vst [vmem:[%s2272_s10 + $0x350] sm:$0xff] %v1211_v60  ;;  %v1057_v4 = vadd.f32 0.5, %v1056_v0  ;;  %v1058_v5 = vpop.f32.mrb[89].mxu0 }
 0x24b   : > { %1913 = vst [vmem:[%s2272_s10 + $0x498] sm:$0xff] %v1574_v61  ;;  %v1385_v6 = vadd.f32 0.5, %v1384_v3  ;;  %v1386_v7 = vpop.f32.mrb[66].mxu1  ;;  %1857 = vst [vmem:[%s2272_s10 + $0x358] sm:$0xff] %v1212_v63  ;;  %v1059_v8 = vadd.f32 0.5, %v1058_v5  ;;  %v1060_v9 = vpop.f32.mrb[90].mxu0 }
 0x24c   : > { %v1511_v10 = vmax.f32 %v1383_v1, 0.0  ;;  %v1387_v11 = vadd.f32 0.5, %v1386_v7  ;;  %v1388_v12 = vpop.f32.mrb[67].mxu1  ;;  %v1149_v13 = vmax.f32 %v1057_v4, 0.0  ;;  %v1061_v2 = vadd.f32 0.5, %v1060_v9  ;;  %v1062_v14 = vpop.f32.mrb[91].mxu0 }
 0x24d   : > { %v1512_v15 = vmax.f32 %v1385_v6, 0.0  ;;  %v1389_v16 = vadd.f32 0.5, %v1388_v12  ;;  %v1150_v17 = vmax.f32 %v1059_v8, 0.0  ;;  %v1063_v18 = vadd.f32 0.5, %v1062_v14 }
 0x24e   : > { %v1575_v19 = vmin.f32 %v1511_v10, 1.0  ;;  %v1513_v20 = vmax.f32 %v1387_v11, 0.0  ;;  %v1213_v21 = vmin.f32 %v1149_v13, 1.0  ;;  %v1151_v22 = vmax.f32 %v1061_v2, 0.0 }
 0x24f   : > { %v1576_v23 = vmin.f32 %v1512_v15, 1.0  ;;  %v1514_v24 = vmax.f32 %v1389_v16, 0.0  ;;  %v1214_v25 = vmin.f32 %v1150_v17, 1.0  ;;  %v1152_v26 = vmax.f32 %v1063_v18, 0.0 }
 0x250   : > { %1914 = vst [vmem:[%s2272_s10 + $0x4a0] sm:$0xff] %v1575_v19  ;;  %v1577_v27 = vmin.f32 %v1513_v20, 1.0  ;;  %1858 = vst [vmem:[%s2272_s10 + $0x360] sm:$0xff] %v1213_v21  ;;  %v1215_v28 = vmin.f32 %v1151_v22, 1.0 }
 0x251   : > { %1915 = vst [vmem:[%s2272_s10 + $0x4a8] sm:$0xff] %v1576_v23  ;;  %v1578_v29 = vmin.f32 %v1514_v24, 1.0  ;;  %v1392_v30 = vpop.f32.mrb[68].mxu1  ;;  %1859 = vst [vmem:[%s2272_s10 + $0x368] sm:$0xff] %v1214_v25  ;;  %v1216_v31 = vmin.f32 %v1152_v26, 1.0  ;;  %v1066_v32 = vpop.f32.mrb[92].mxu0 }
 0x252   : > { %1916 = vst [vmem:[%s2272_s10 + $0x4b0] sm:$0xff] %v1577_v27  ;;  %v1393_v33 = vadd.f32 0.5, %v1392_v30  ;;  %v1394_v34 = vpop.f32.mrb[69].mxu1  ;;  %1860 = vst [vmem:[%s2272_s10 + $0x370] sm:$0xff] %v1215_v28  ;;  %v1067_v35 = vadd.f32 0.5, %v1066_v32  ;;  %v1068_v36 = vpop.f32.mrb[93].mxu0 }
 0x253   : > { %1917 = vst [vmem:[%s2272_s10 + $0x4b8] sm:$0xff] %v1578_v29  ;;  %v1395_v37 = vadd.f32 0.5, %v1394_v34  ;;  %v1396_v38 = vpop.f32.mrb[70].mxu1  ;;  %1861 = vst [vmem:[%s2272_s10 + $0x378] sm:$0xff] %v1216_v31  ;;  %v1069_v39 = vadd.f32 0.5, %v1068_v36  ;;  %v1070_v40 = vpop.f32.mrb[94].mxu0 }
 0x254   : > { %v1515_v41 = vmax.f32 %v1393_v33, 0.0  ;;  %v1397_v42 = vadd.f32 0.5, %v1396_v38  ;;  %v1398_v43 = vpop.f32.mrb[71].mxu1  ;;  %v1153_v44 = vmax.f32 %v1067_v35, 0.0  ;;  %v1071_v45 = vadd.f32 0.5, %v1070_v40  ;;  %v1072_v46 = vpop.f32.mrb[95].mxu0 }
 0x255   : > { %v1516_v47 = vmax.f32 %v1395_v37, 0.0  ;;  %v1399_v48 = vadd.f32 0.5, %v1398_v43  ;;  %v1154_v49 = vmax.f32 %v1069_v39, 0.0  ;;  %v1073_v50 = vadd.f32 0.5, %v1072_v46 }
 0x256   : > { %v1579_v51 = vmin.f32 %v1515_v41, 1.0  ;;  %v1517_v52 = vmax.f32 %v1397_v42, 0.0  ;;  %v1217_v53 = vmin.f32 %v1153_v44, 1.0  ;;  %v1155_v54 = vmax.f32 %v1071_v45, 0.0 }
 0x257   : > { %v1580_v55 = vmin.f32 %v1516_v47, 1.0  ;;  %v1518_v56 = vmax.f32 %v1399_v48, 0.0  ;;  %v1218_v57 = vmin.f32 %v1154_v49, 1.0  ;;  %v1156_v58 = vmax.f32 %v1073_v50, 0.0 }
 0x258   : > { %1918 = vst [vmem:[%s2272_s10 + $0x4c0] sm:$0xff] %v1579_v51  ;;  %v1581_v59 = vmin.f32 %v1517_v52, 1.0  ;;  %1862 = vst [vmem:[%s2272_s10 + $0x380] sm:$0xff] %v1217_v53  ;;  %v1219_v60 = vmin.f32 %v1155_v54, 1.0 }
 0x259   : > { %1919 = vst [vmem:[%s2272_s10 + $0x4c8] sm:$0xff] %v1580_v55  ;;  %v1582_v61 = vmin.f32 %v1518_v56, 1.0  ;;  %v1402_v62 = vpop.f32.mrb[72].mxu1  ;;  %1863 = vst [vmem:[%s2272_s10 + $0x388] sm:$0xff] %v1218_v57  ;;  %v1220_v63 = vmin.f32 %v1156_v58, 1.0  ;;  %v1076_v0 = vpop.f32.mrb[96].mxu0 }
 0x25a   : > { %1920 = vst [vmem:[%s2272_s10 + $0x4d0] sm:$0xff] %v1581_v59  ;;  %v1403_v1 = vadd.f32 0.5, %v1402_v62  ;;  %v1404_v3 = vpop.f32.mrb[73].mxu1  ;;  %1864 = vst [vmem:[%s2272_s10 + $0x390] sm:$0xff] %v1219_v60  ;;  %v1077_v4 = vadd.f32 0.5, %v1076_v0  ;;  %v1078_v5 = vpop.f32.mrb[97].mxu0 }
 0x25b   : > { %1921 = vst [vmem:[%s2272_s10 + $0x4d8] sm:$0xff] %v1582_v61  ;;  %v1405_v6 = vadd.f32 0.5, %v1404_v3  ;;  %v1406_v7 = vpop.f32.mrb[74].mxu1  ;;  %1865 = vst [vmem:[%s2272_s10 + $0x398] sm:$0xff] %v1220_v63  ;;  %v1079_v8 = vadd.f32 0.5, %v1078_v5  ;;  %v1080_v9 = vpop.f32.mrb[98].mxu0 }
 0x25c   : > { %v1519_v10 = vmax.f32 %v1403_v1, 0.0  ;;  %v1407_v11 = vadd.f32 0.5, %v1406_v7  ;;  %v1408_v12 = vpop.f32.mrb[75].mxu1  ;;  %v1157_v13 = vmax.f32 %v1077_v4, 0.0  ;;  %v1081_v2 = vadd.f32 0.5, %v1080_v9  ;;  %v1082_v14 = vpop.f32.mrb[99].mxu0 }
 0x25d   : > { %v1520_v15 = vmax.f32 %v1405_v6, 0.0  ;;  %v1409_v16 = vadd.f32 0.5, %v1408_v12  ;;  %v1158_v17 = vmax.f32 %v1079_v8, 0.0  ;;  %v1083_v18 = vadd.f32 0.5, %v1082_v14 }
 0x25e   : > { %v1583_v19 = vmin.f32 %v1519_v10, 1.0  ;;  %v1521_v20 = vmax.f32 %v1407_v11, 0.0  ;;  %v1221_v21 = vmin.f32 %v1157_v13, 1.0  ;;  %v1159_v22 = vmax.f32 %v1081_v2, 0.0 }
 0x25f   : > { %v1584_v23 = vmin.f32 %v1520_v15, 1.0  ;;  %v1522_v24 = vmax.f32 %v1409_v16, 0.0  ;;  %v1222_v25 = vmin.f32 %v1158_v17, 1.0  ;;  %v1160_v26 = vmax.f32 %v1083_v18, 0.0 }
 0x260   : > { %1922 = vst [vmem:[%s2272_s10 + $0x4e0] sm:$0xff] %v1583_v19  ;;  %v1585_v27 = vmin.f32 %v1521_v20, 1.0  ;;  %1866 = vst [vmem:[%s2272_s10 + $0x3a0] sm:$0xff] %v1221_v21  ;;  %v1223_v28 = vmin.f32 %v1159_v22, 1.0 }
 0x261   : > { %1923 = vst [vmem:[%s2272_s10 + $0x4e8] sm:$0xff] %v1584_v23  ;;  %v1586_v29 = vmin.f32 %v1522_v24, 1.0  ;;  %v1412_v30 = vpop.f32.mrb[76].mxu1  ;;  %1867 = vst [vmem:[%s2272_s10 + $0x3a8] sm:$0xff] %v1222_v25  ;;  %v1224_v31 = vmin.f32 %v1160_v26, 1.0  ;;  %v1086_v32 = vpop.f32.mrb[100].mxu0 }
 0x262   : > { %1924 = vst [vmem:[%s2272_s10 + $0x4f0] sm:$0xff] %v1585_v27  ;;  %v1413_v33 = vadd.f32 0.5, %v1412_v30  ;;  %v1414_v34 = vpop.f32.mrb[77].mxu1  ;;  %1868 = vst [vmem:[%s2272_s10 + $0x3b0] sm:$0xff] %v1223_v28  ;;  %v1087_v35 = vadd.f32 0.5, %v1086_v32  ;;  %v1088_v36 = vpop.f32.mrb[101].mxu0 }
 0x263   : > { %1925 = vst [vmem:[%s2272_s10 + $0x4f8] sm:$0xff] %v1586_v29  ;;  %v1415_v37 = vadd.f32 0.5, %v1414_v34  ;;  %v1416_v38 = vpop.f32.mrb[78].mxu1  ;;  %1869 = vst [vmem:[%s2272_s10 + $0x3b8] sm:$0xff] %v1224_v31  ;;  %v1089_v39 = vadd.f32 0.5, %v1088_v36  ;;  %v1090_v40 = vpop.f32.mrb[102].mxu0 }
 0x264   : > { %v1523_v41 = vmax.f32 %v1413_v33, 0.0  ;;  %v1417_v42 = vadd.f32 0.5, %v1416_v38  ;;  %v1418_v43 = vpop.f32.mrb[79].mxu1  ;;  %v1161_v44 = vmax.f32 %v1087_v35, 0.0  ;;  %v1091_v45 = vadd.f32 0.5, %v1090_v40  ;;  %v1092_v46 = vpop.f32.mrb[103].mxu0 }
 0x265   : > { %v1524_v47 = vmax.f32 %v1415_v37, 0.0  ;;  %v1419_v48 = vadd.f32 0.5, %v1418_v43  ;;  %v1162_v49 = vmax.f32 %v1089_v39, 0.0  ;;  %v1093_v50 = vadd.f32 0.5, %v1092_v46 }
 0x266   : > { %v1587_v51 = vmin.f32 %v1523_v41, 1.0  ;;  %v1525_v52 = vmax.f32 %v1417_v42, 0.0  ;;  %v1225_v53 = vmin.f32 %v1161_v44, 1.0  ;;  %v1163_v54 = vmax.f32 %v1091_v45, 0.0 }
 0x267   : > { %v1588_v55 = vmin.f32 %v1524_v47, 1.0  ;;  %v1526_v56 = vmax.f32 %v1419_v48, 0.0  ;;  %v1226_v57 = vmin.f32 %v1162_v49, 1.0  ;;  %v1164_v58 = vmax.f32 %v1093_v50, 0.0 }
 0x268   : > { %1926 = vst [vmem:[%s2272_s10 + $0x500] sm:$0xff] %v1587_v51  ;;  %v1589_v59 = vmin.f32 %v1525_v52, 1.0  ;;  %1870 = vst [vmem:[%s2272_s10 + $0x3c0] sm:$0xff] %v1225_v53  ;;  %v1227_v60 = vmin.f32 %v1163_v54, 1.0 }
 0x269   : > { %1927 = vst [vmem:[%s2272_s10 + $0x508] sm:$0xff] %v1588_v55  ;;  %v1590_v61 = vmin.f32 %v1526_v56, 1.0  ;;  %v1422_v62 = vpop.f32.mrb[80].mxu1  ;;  %1871 = vst [vmem:[%s2272_s10 + $0x3c8] sm:$0xff] %v1226_v57  ;;  %v1228_v63 = vmin.f32 %v1164_v58, 1.0  ;;  %v1096_v0 = vpop.f32.mrb[104].mxu0 }
 0x26a   : > { %1928 = vst [vmem:[%s2272_s10 + $0x510] sm:$0xff] %v1589_v59  ;;  %v1423_v1 = vadd.f32 0.5, %v1422_v62  ;;  %v1424_v3 = vpop.f32.mrb[81].mxu1  ;;  %1872 = vst [vmem:[%s2272_s10 + $0x3d0] sm:$0xff] %v1227_v60  ;;  %v1097_v4 = vadd.f32 0.5, %v1096_v0  ;;  %v1098_v5 = vpop.f32.mrb[105].mxu0 }
 0x26b   : > { %1929 = vst [vmem:[%s2272_s10 + $0x518] sm:$0xff] %v1590_v61  ;;  %v1425_v6 = vadd.f32 0.5, %v1424_v3  ;;  %v1426_v7 = vpop.f32.mrb[82].mxu1  ;;  %1873 = vst [vmem:[%s2272_s10 + $0x3d8] sm:$0xff] %v1228_v63  ;;  %v1099_v8 = vadd.f32 0.5, %v1098_v5  ;;  %v1100_v9 = vpop.f32.mrb[106].mxu0 }
 0x26c   : > { %v1527_v10 = vmax.f32 %v1423_v1, 0.0  ;;  %v1427_v11 = vadd.f32 0.5, %v1426_v7  ;;  %v1428_v12 = vpop.f32.mrb[83].mxu1  ;;  %v1165_v13 = vmax.f32 %v1097_v4, 0.0  ;;  %v1101_v2 = vadd.f32 0.5, %v1100_v9  ;;  %v1102_v14 = vpop.f32.mrb[107].mxu0 }
 0x26d   : > { %v1528_v15 = vmax.f32 %v1425_v6, 0.0  ;;  %v1429_v16 = vadd.f32 0.5, %v1428_v12  ;;  %v1166_v17 = vmax.f32 %v1099_v8, 0.0  ;;  %v1103_v18 = vadd.f32 0.5, %v1102_v14 }
 0x26e   : > { %v1591_v19 = vmin.f32 %v1527_v10, 1.0  ;;  %v1529_v20 = vmax.f32 %v1427_v11, 0.0  ;;  %v1229_v21 = vmin.f32 %v1165_v13, 1.0  ;;  %v1167_v22 = vmax.f32 %v1101_v2, 0.0 }
 0x26f   : > { %v1592_v23 = vmin.f32 %v1528_v15, 1.0  ;;  %v1530_v24 = vmax.f32 %v1429_v16, 0.0  ;;  %v1230_v25 = vmin.f32 %v1166_v17, 1.0  ;;  %v1168_v26 = vmax.f32 %v1103_v18, 0.0 }
 0x270   : > { %1930 = vst [vmem:[%s2272_s10 + $0x520] sm:$0xff] %v1591_v19  ;;  %v1593_v27 = vmin.f32 %v1529_v20, 1.0  ;;  %1874 = vst [vmem:[%s2272_s10 + $0x3e0] sm:$0xff] %v1229_v21  ;;  %v1231_v28 = vmin.f32 %v1167_v22, 1.0 }
 0x271   : > { %1931 = vst [vmem:[%s2272_s10 + $0x528] sm:$0xff] %v1592_v23  ;;  %v1594_v29 = vmin.f32 %v1530_v24, 1.0  ;;  %v1432_v30 = vpop.f32.mrb[84].mxu1  ;;  %1875 = vst [vmem:[%s2272_s10 + $0x3e8] sm:$0xff] %v1230_v25  ;;  %v1232_v31 = vmin.f32 %v1168_v26, 1.0 }
 0x272   : > { %1932 = vst [vmem:[%s2272_s10 + $0x530] sm:$0xff] %v1593_v27  ;;  %v1433_v32 = vadd.f32 0.5, %v1432_v30  ;;  %v1434_v33 = vpop.f32.mrb[85].mxu1  ;;  %1876 = vst [vmem:[%s2272_s10 + $0x3f0] sm:$0xff] %v1231_v28 }
 0x273   : > { %1933 = vst [vmem:[%s2272_s10 + $0x538] sm:$0xff] %v1594_v29  ;;  %v1435_v34 = vadd.f32 0.5, %v1434_v33  ;;  %v1436_v35 = vpop.f32.mrb[86].mxu1  ;;  %1877 = vst [vmem:[%s2272_s10 + $0x3f8] sm:$0xff] %v1232_v31 }
 0x274   : > { %v1531_v36 = vmax.f32 %v1433_v32, 0.0  ;;  %v1437_v37 = vadd.f32 0.5, %v1436_v35  ;;  %v1438_v38 = vpop.f32.mrb[87].mxu1 }
 0x275   : > { %v1532_v39 = vmax.f32 %v1435_v34, 0.0  ;;  %v1439_v40 = vadd.f32 0.5, %v1438_v38 }
 0x276   : > { %v1595_v41 = vmin.f32 %v1531_v36, 1.0  ;;  %v1533_v42 = vmax.f32 %v1437_v37, 0.0 }
 0x277   : > { %v1596_v43 = vmin.f32 %v1532_v39, 1.0  ;;  %v1534_v44 = vmax.f32 %v1439_v40, 0.0 }
 0x278   : > { %1934 = vst [vmem:[%s2272_s10 + $0x540] sm:$0xff] %v1595_v41  ;;  %v1597_v45 = vmin.f32 %v1533_v42, 1.0 }
 0x279   : > { %1935 = vst [vmem:[%s2272_s10 + $0x548] sm:$0xff] %v1596_v43  ;;  %v1598_v46 = vmin.f32 %v1534_v44, 1.0  ;;  %v1442_v47 = vpop.f32.mrb[88].mxu1 }
 0x27a   : > { %1936 = vst [vmem:[%s2272_s10 + $0x550] sm:$0xff] %v1597_v45  ;;  %v1443_v48 = vadd.f32 0.5, %v1442_v47  ;;  %v1444_v49 = vpop.f32.mrb[89].mxu1 }
 0x27b   : > { %1937 = vst [vmem:[%s2272_s10 + $0x558] sm:$0xff] %v1598_v46  ;;  %v1445_v50 = vadd.f32 0.5, %v1444_v49  ;;  %v1446_v51 = vpop.f32.mrb[90].mxu1 }
 0x27c   : > { %v1535_v52 = vmax.f32 %v1443_v48, 0.0  ;;  %v1447_v53 = vadd.f32 0.5, %v1446_v51  ;;  %v1448_v54 = vpop.f32.mrb[91].mxu1 }
 0x27d   : > { %v1536_v55 = vmax.f32 %v1445_v50, 0.0  ;;  %v1449_v56 = vadd.f32 0.5, %v1448_v54 }
 0x27e   : > { %v1599_v57 = vmin.f32 %v1535_v52, 1.0  ;;  %v1537_v58 = vmax.f32 %v1447_v53, 0.0 }
 0x27f   : > { %v1600_v59 = vmin.f32 %v1536_v55, 1.0  ;;  %v1538_v60 = vmax.f32 %v1449_v56, 0.0 }
 0x280   : > { %1938 = vst [vmem:[%s2272_s10 + $0x560] sm:$0xff] %v1599_v57  ;;  %v1601_v61 = vmin.f32 %v1537_v58, 1.0 }
 0x281   : > { %1939 = vst [vmem:[%s2272_s10 + $0x568] sm:$0xff] %v1600_v59  ;;  %v1602_v62 = vmin.f32 %v1538_v60, 1.0  ;;  %v1452_v63 = vpop.f32.mrb[92].mxu1 }
 0x282   : > { %1940 = vst [vmem:[%s2272_s10 + $0x570] sm:$0xff] %v1601_v61  ;;  %v1453_v0 = vadd.f32 0.5, %v1452_v63  ;;  %v1454_v1 = vpop.f32.mrb[93].mxu1 }
 0x283   : > { %1941 = vst [vmem:[%s2272_s10 + $0x578] sm:$0xff] %v1602_v62  ;;  %v1455_v3 = vadd.f32 0.5, %v1454_v1  ;;  %v1456_v4 = vpop.f32.mrb[94].mxu1 }
 0x284   : > { %v1539_v5 = vmax.f32 %v1453_v0, 0.0  ;;  %v1457_v6 = vadd.f32 0.5, %v1456_v4  ;;  %v1458_v7 = vpop.f32.mrb[95].mxu1 }
 0x285   : > { %v1540_v8 = vmax.f32 %v1455_v3, 0.0  ;;  %v1459_v9 = vadd.f32 0.5, %v1458_v7 }
 0x286   : > { %v1603_v10 = vmin.f32 %v1539_v5, 1.0  ;;  %v1541_v11 = vmax.f32 %v1457_v6, 0.0 }
 0x287   : > { %v1604_v12 = vmin.f32 %v1540_v8, 1.0  ;;  %v1542_v13 = vmax.f32 %v1459_v9, 0.0 }
 0x288   : > { %1942 = vst [vmem:[%s2272_s10 + $0x580] sm:$0xff] %v1603_v10  ;;  %v1605_v2 = vmin.f32 %v1541_v11, 1.0 }
 0x289   : > { %1943 = vst [vmem:[%s2272_s10 + $0x588] sm:$0xff] %v1604_v12  ;;  %v1606_v14 = vmin.f32 %v1542_v13, 1.0  ;;  %v1462_v15 = vpop.f32.mrb[96].mxu1 }
 0x28a   : > { %1944 = vst [vmem:[%s2272_s10 + $0x590] sm:$0xff] %v1605_v2  ;;  %v1463_v16 = vadd.f32 0.5, %v1462_v15  ;;  %v1464_v17 = vpop.f32.mrb[97].mxu1 }
 0x28b   : > { %1945 = vst [vmem:[%s2272_s10 + $0x598] sm:$0xff] %v1606_v14  ;;  %v1465_v18 = vadd.f32 0.5, %v1464_v17  ;;  %v1466_v19 = vpop.f32.mrb[98].mxu1 }
 0x28c   : > { %v1543_v20 = vmax.f32 %v1463_v16, 0.0  ;;  %v1467_v21 = vadd.f32 0.5, %v1466_v19  ;;  %v1468_v22 = vpop.f32.mrb[99].mxu1 }
 0x28d   : > { %v1544_v23 = vmax.f32 %v1465_v18, 0.0  ;;  %v1469_v24 = vadd.f32 0.5, %v1468_v22 }
 0x28e   : > { %v1607_v25 = vmin.f32 %v1543_v20, 1.0  ;;  %v1545_v26 = vmax.f32 %v1467_v21, 0.0 }
 0x28f   : > { %v1608_v27 = vmin.f32 %v1544_v23, 1.0  ;;  %v1546_v28 = vmax.f32 %v1469_v24, 0.0 }
 0x290   : > { %1946 = vst [vmem:[%s2272_s10 + $0x5a0] sm:$0xff] %v1607_v25  ;;  %v1609_v29 = vmin.f32 %v1545_v26, 1.0 }
 0x291   : > { %1947 = vst [vmem:[%s2272_s10 + $0x5a8] sm:$0xff] %v1608_v27  ;;  %v1610_v30 = vmin.f32 %v1546_v28, 1.0  ;;  %v1472_v31 = vpop.f32.mrb[100].mxu1 }
 0x292   : > { %1948 = vst [vmem:[%s2272_s10 + $0x5b0] sm:$0xff] %v1609_v29  ;;  %v1473_v32 = vadd.f32 0.5, %v1472_v31  ;;  %v1474_v33 = vpop.f32.mrb[101].mxu1 }
 0x293   : > { %1949 = vst [vmem:[%s2272_s10 + $0x5b8] sm:$0xff] %v1610_v30  ;;  %v1475_v34 = vadd.f32 0.5, %v1474_v33  ;;  %v1476_v35 = vpop.f32.mrb[102].mxu1 }
 0x294   : > { %v1547_v36 = vmax.f32 %v1473_v32, 0.0  ;;  %v1477_v37 = vadd.f32 0.5, %v1476_v35  ;;  %v1478_v38 = vpop.f32.mrb[103].mxu1 }
 0x295   : > { %v1548_v39 = vmax.f32 %v1475_v34, 0.0  ;;  %v1479_v40 = vadd.f32 0.5, %v1478_v38 }
 0x296   : > { %v1611_v41 = vmin.f32 %v1547_v36, 1.0  ;;  %v1549_v42 = vmax.f32 %v1477_v37, 0.0 }
 0x297   : > { %v1612_v43 = vmin.f32 %v1548_v39, 1.0  ;;  %v1550_v44 = vmax.f32 %v1479_v40, 0.0 }
 0x298   : > { %1950 = vst [vmem:[%s2272_s10 + $0x5c0] sm:$0xff] %v1611_v41  ;;  %v1613_v45 = vmin.f32 %v1549_v42, 1.0 }
 0x299   : > { %1951 = vst [vmem:[%s2272_s10 + $0x5c8] sm:$0xff] %v1612_v43  ;;  %v1614_v46 = vmin.f32 %v1550_v44, 1.0  ;;  %v1482_v47 = vpop.f32.mrb[104].mxu1 }
 0x29a   : > { %1952 = vst [vmem:[%s2272_s10 + $0x5d0] sm:$0xff] %v1613_v45  ;;  %v1483_v48 = vadd.f32 0.5, %v1482_v47  ;;  %v1484_v49 = vpop.f32.mrb[105].mxu1 }
 0x29b   : > { %1953 = vst [vmem:[%s2272_s10 + $0x5d8] sm:$0xff] %v1614_v46  ;;  %v1485_v50 = vadd.f32 0.5, %v1484_v49  ;;  %v1486_v51 = vpop.f32.mrb[106].mxu1 }
 0x29c   : > { %v1551_v52 = vmax.f32 %v1483_v48, 0.0  ;;  %v1487_v53 = vadd.f32 0.5, %v1486_v51  ;;  %v1488_v54 = vpop.f32.mrb[107].mxu1 }
 0x29d   : > { %v1552_v55 = vmax.f32 %v1485_v50, 0.0  ;;  %v1489_v56 = vadd.f32 0.5, %v1488_v54 }
 0x29e   : > { %v1615_v57 = vmin.f32 %v1551_v52, 1.0  ;;  %v1553_v58 = vmax.f32 %v1487_v53, 0.0 }
 0x29f   : > { %v1616_v59 = vmin.f32 %v1552_v55, 1.0  ;;  %v1554_v60 = vmax.f32 %v1489_v56, 0.0 }
 0x2a0   : > { %1954 = vst [vmem:[%s2272_s10 + $0x5e0] sm:$0xff] %v1615_v57  ;;  %v1617_v61 = vmin.f32 %v1553_v58, 1.0 }
 0x2a1   : > { %1955 = vst [vmem:[%s2272_s10 + $0x5e8] sm:$0xff] %v1616_v59  ;;  %v1618_v62 = vmin.f32 %v1554_v60, 1.0 }
 0x2a2   : > { %1956 = vst [vmem:[%s2272_s10 + $0x5f0] sm:$0xff] %v1617_v61 }
 0x2a3   : > { %1957 = vst [vmem:[%s2272_s10 + $0x5f8] sm:$0xff] %v1618_v62 }
 0x2a4 PF: > { %s13_s12 = sadd.s32 1, %s2008_s12  }
 0x2a5   : > { %p10_p5 = scmp.ge.s32.totalorder %s13_s12, 4  }
 0x2a7   :  { %12 = sbr.rel (!%p10_p5) target bundleno = 1 (0x1), region = 64 }

</bundles_post_ra>
